<compile_context>
chip_gen: v7x
topology: tpu7x:2x2x1
jax: 0.10.0
libtpu: 0.0.40
codegen_flags: <defaults>
</compile_context>

<pallas_src>
import functools
import math

import jax
import jax.numpy as jnp
from jax import lax
from jax.experimental import pallas as pl
from jax.experimental.pallas import tpu as pltpu


NUM_HEADS = 4
LN_EPS = 1e-5
INV_SQRT2 = 0.7071067811865476


def _layernorm_cn(v, w, b):
    # v: (C, L) channel-major; w, b: (C, 1). Normalize over the channel axis.
    mu = jnp.mean(v, axis=0, keepdims=True)
    d = v - mu
    var = jnp.mean(d * d, axis=0, keepdims=True)
    return d * lax.rsqrt(var + LN_EPS) * w + b


def self_attention_kernel(
    x_ref,                          # (C, B*N)  lane-dense activations
    ln_w_ref, ln_b_ref,             # (C, 1)
    wqkv_ref, bqkv_ref,             # (3C, C), (3C, 1)  Q rows pre-scaled
    opw_ref, opb_ref,               # (C, C), (C, 1)
    ln2_w_ref, ln2_b_ref,           # (C, 1)
    fc1_w_ref, fc1_b_ref,           # (C, C), (C, 1)
    fc2_w_ref, fc2_b_ref,           # (C, C), (C, 1)
    o_ref,                          # (C, B*N)
    *, batch, seq, num_heads,
):
    x = x_ref[...]                                      # (C, B*N) f32
    C = x.shape[0]
    H, B, N = num_heads, batch, seq
    D = C // H

    # ----- LayerNorm (over channels) before attention -----
    x_ln = _layernorm_cn(x, ln_w_ref[...], ln_b_ref[...])

    # ----- fused QKV projection: one MXU pass with M = 3C -----
    qkv = jnp.dot(wqkv_ref[...], x_ln,
                  preferred_element_type=jnp.float32) + bqkv_ref[...]   # (3C, B*N)
    q = qkv[:C]            # already carries the 1/sqrt(D) softmax scale
    k = qkv[C:2 * C]
    v = qkv[2 * C:]

    # ----- multi-head attention, per batch (static unroll), batched over heads -----
    parts = []
    for b in range(B):
        lo, hi = b * N, (b + 1) * N
        qb = q[:, lo:hi].reshape(H, D, N)               # (H, D, N)
        kb = k[:, lo:hi].reshape(H, D, N)
        vb = v[:, lo:hi].reshape(H, D, N)
        # Contract over d directly (transposed-LHS dot): no (H, N, D) swapaxes.
        s = jnp.einsum("hdq,hdk->hqk", qb, kb,
                       preferred_element_type=jnp.float32)              # (H, N, N)
        s = s - jnp.max(s, axis=-1, keepdims=True)
        p = jnp.exp(s)
        p = p * pl.reciprocal(jnp.sum(p, axis=-1, keepdims=True), approx=True)
        ob = jnp.einsum("hdk,hqk->hdq", vb, p,
                        preferred_element_type=jnp.float32)             # (H, D, N)
        parts.append(ob.reshape(C, N))                  # head merge = sublane reshape
    attn = parts[0] if B == 1 else jnp.concatenate(parts, axis=-1)       # (C, B*N)

    # ----- output projection + residual with the original x -----
    attn_out = jnp.dot(opw_ref[...], attn,
                       preferred_element_type=jnp.float32) + opb_ref[...]
    av = attn_out + x

    # ----- feed-forward: LN -> Linear -> GELU(exact) -> Linear, + residual -----
    x2 = _layernorm_cn(av, ln2_w_ref[...], ln2_b_ref[...])
    h1 = jnp.dot(fc1_w_ref[...], x2,
                 preferred_element_type=jnp.float32) + fc1_b_ref[...]
    g = 0.5 * h1 * (1.0 + lax.erf(h1 * INV_SQRT2))      # exact GELU (mul, not div)
    h2 = jnp.dot(fc2_w_ref[...], g,
                 preferred_element_type=jnp.float32) + fc2_b_ref[...]

    o_ref[...] = (h2 + av).astype(o_ref.dtype)


def self_attention_pallas(x_nchw, params):
    """x_nchw: (B, C, S, S) -> (B, C, S, S), matching the PyTorch module."""
    B, C, S, _ = x_nchw.shape
    N = S * S
    H = NUM_HEADS
    D = C // H
    assert C % H == 0

    (ln_w, ln_b, ipw, ipb, opw, opb,
     ln2_w, ln2_b, fc1_w, fc1_b, fc2_w, fc2_b) = params

    # (B, C, S, S) -> (C, B*N): fold batch into the lane axis so the kernel's
    # blocks are 128-lane dense.  This tiny (16 KB) transpose runs in XLA,
    # outside the kernel.
    x_cbn = jnp.transpose(x_nchw.reshape(B, C, N), (1, 0, 2)).reshape(C, B * N)

    col = lambda a: a.reshape(-1, 1)

    # Fold the 1/sqrt(D) softmax scale into the Q rows of the fused QKV
    # projection at trace time (free) instead of scaling (H, N, N) scores.
    scale = 1.0 / math.sqrt(D)
    w_qkv = ipw.at[:C].multiply(scale)
    b_qkv = col(ipb.at[:C].multiply(scale))

    # Advisory cost estimate for XLA's scheduler.
    flops = 4 * B * C * N * (3 * C + N)
    transcendentals = B * (H * N * N + C * N)
    bytes_accessed = 4 * (2 * C * B * N + 6 * C * C + 12 * C)

    # VMEM limit derived from the actual footprint (with slack), clamped so the
    # same setting is legal on v7x's 64 MiB VMEM.
    footprint = 4 * (12 * C * B * N + 4 * H * N * N + 7 * C * C + 16 * C)
    vmem_limit = int(min(max(3 * footprint, 4 << 20), 64 << 20))

    kernel = functools.partial(self_attention_kernel,
                               batch=B, seq=N, num_heads=H)

    # No grid: a single invocation with every operand fully resident in VMEM
    # (no per-grid-step pipeline overhead; weights fetched exactly once).
    out = pl.pallas_call(
        kernel,
        out_shape=jax.ShapeDtypeStruct((C, B * N), x_cbn.dtype),
        compiler_params=pltpu.CompilerParams(vmem_limit_bytes=vmem_limit),
        cost_estimate=pl.CostEstimate(
            flops=flops,
            transcendentals=transcendentals,
            bytes_accessed=bytes_accessed,
        ),
    )(x_cbn,
      col(ln_w), col(ln_b),
      w_qkv, b_qkv,
      opw, col(opb),
      col(ln2_w), col(ln2_b),
      fc1_w, col(fc1_b), fc2_w, col(fc2_b))

    # (C, B*N) -> NCHW (inverse of the wrapper fold).
    return jnp.transpose(out.reshape(C, B, N), (1, 0, 2)).reshape(B, C, S, S)


def self_attention_ref(x_nchw, params):
    """Pure-JAX reference mirroring the PyTorch forward."""
    (ln_w, ln_b, ipw, ipb, opw, opb,
     ln2_w, ln2_b, fc1_w, fc1_b, fc2_w, fc2_b) = params
    B, C, S, _ = x_nchw.shape
    N = S * S
    x = jnp.transpose(x_nchw.reshape(B, C, N), (0, 2, 1))       # (B, N, C)

    def ln(v, w, b):
        mu = jnp.mean(v, axis=-1, keepdims=True)
        var = jnp.mean((v - mu) ** 2, axis=-1, keepdims=True)
        return (v - mu) / jnp.sqrt(var + LN_EPS) * w + b

    x_ln = ln(x, ln_w, ln_b)
    qkv = jnp.einsum("bnc,dc->bnd", x_ln, ipw) + ipb
    q, k, v = jnp.split(qkv, 3, axis=-1)
    D = C // NUM_HEADS
    q = q.reshape(B, N, NUM_HEADS, D).transpose(0, 2, 1, 3)
    k = k.reshape(B, N, NUM_HEADS, D).transpose(0, 2, 1, 3)
    v = v.reshape(B, N, NUM_HEADS, D).transpose(0, 2, 1, 3)
    s = jnp.einsum("bhqd,bhkd->bhqk", q, k) / math.sqrt(D)
    p = jax.nn.softmax(s, axis=-1)
    o = jnp.einsum("bhqk,bhkd->bhqd", p, v).transpose(0, 2, 1, 3).reshape(B, N, C)
    attn_out = jnp.einsum("bnc,dc->bnd", o, opw) + opb
    av = attn_out + x
    x2 = ln(av, ln2_w, ln2_b)
    h1 = jnp.einsum("bnc,dc->bnd", x2, fc1_w) + fc1_b
    g = 0.5 * h1 * (1.0 + lax.erf(h1 / jnp.sqrt(2.0)))
    h2 = jnp.einsum("bnc,dc->bnd", g, fc2_w) + fc2_b
    out = h2 + av
    return jnp.transpose(out, (0, 2, 1)).reshape(B, C, S, S)


def make_params(key, C):
    ks = jax.random.split(key, 12)
    scale = 0.1
    ln_w = jnp.ones((C,), jnp.float32)
    ln_b = jnp.zeros((C,), jnp.float32)
    ipw = scale * jax.random.normal(ks[0], (3 * C, C), jnp.float32)
    ipb = scale * jax.random.normal(ks[1], (3 * C,), jnp.float32)
    opw = scale * jax.random.normal(ks[2], (C, C), jnp.float32)
    opb = scale * jax.random.normal(ks[3], (C,), jnp.float32)
    ln2_w = 1.0 + scale * jax.random.normal(ks[4], (C,), jnp.float32)
    ln2_b = scale * jax.random.normal(ks[5], (C,), jnp.float32)
    fc1_w = scale * jax.random.normal(ks[6], (C, C), jnp.float32)
    fc1_b = scale * jax.random.normal(ks[7], (C,), jnp.float32)
    fc2_w = scale * jax.random.normal(ks[8], (C, C), jnp.float32)
    fc2_b = scale * jax.random.normal(ks[9], (C,), jnp.float32)
    return (ln_w, ln_b, ipw, ipb, opw, opb,
            ln2_w, ln2_b, fc1_w, fc1_b, fc2_w, fc2_b)


if __name__ == "__main__":
    B, C, S = 2, 32, 8            # channels divisible by num_heads=4; B*S*S = 128 lanes
    key = jax.random.PRNGKey(0)
    kx, kp = jax.random.split(key)
    x = jax.random.normal(kx, (B, C, S, S), jnp.float32)
    params = make_params(kp, C)

    out = jax.block_until_ready(self_attention_pallas(x, params))
    ref = jax.block_until_ready(self_attention_ref(x, params))

    assert out.shape == (B, C, S, S)
    assert bool(jnp.all(jnp.isfinite(out)))
    # Tolerance relaxed vs. a fully-exact path because the softmax denominator
    # uses the EUP approximate reciprocal (pl.reciprocal(approx=True)).
    err = float(jnp.max(jnp.abs(out - ref)))
    assert jnp.allclose(out, ref, atol=2e-3, rtol=2e-3), err
    print("KERNEL_OK")
</pallas_src>

<mosaic_0001>
module attributes {stable_mosaic.version = 11 : i64} {
  func.func @self_attention_kernel(%arg0: memref<32x128xf32, #tpu.memory_space<vmem>>, %arg1: memref<32x1xf32, #tpu.memory_space<vmem>>, %arg2: memref<32x1xf32, #tpu.memory_space<vmem>>, %arg3: memref<96x32xf32, #tpu.memory_space<vmem>>, %arg4: memref<96x1xf32, #tpu.memory_space<vmem>>, %arg5: memref<32x32xf32, #tpu.memory_space<vmem>>, %arg6: memref<32x1xf32, #tpu.memory_space<vmem>>, %arg7: memref<32x1xf32, #tpu.memory_space<vmem>>, %arg8: memref<32x1xf32, #tpu.memory_space<vmem>>, %arg9: memref<32x32xf32, #tpu.memory_space<vmem>>, %arg10: memref<32x1xf32, #tpu.memory_space<vmem>>, %arg11: memref<32x32xf32, #tpu.memory_space<vmem>>, %arg12: memref<32x1xf32, #tpu.memory_space<vmem>>, %arg13: memref<32x128xf32, #tpu.memory_space<vmem>>) attributes {dimension_semantics = [], scalar_prefetch = 0 : i64, scratch_operands = 0 : i64, tpu.core_type = #tpu.core_type<tc>} {
    %c0 = arith.constant 0 : index
    %c0_0 = arith.constant 0 : index
    %0 = vector.load %arg0[%c0, %c0_0] : memref<32x128xf32, #tpu.memory_space<vmem>>, vector<32x128xf32>
    %c0_1 = arith.constant 0 : index
    %c0_2 = arith.constant 0 : index
    %1 = vector.load %arg1[%c0_1, %c0_2] : memref<32x1xf32, #tpu.memory_space<vmem>>, vector<32x1xf32>
    %c0_3 = arith.constant 0 : index
    %c0_4 = arith.constant 0 : index
    %2 = vector.load %arg2[%c0_3, %c0_4] : memref<32x1xf32, #tpu.memory_space<vmem>>, vector<32x1xf32>
    %cst = arith.constant dense<0.000000e+00> : vector<128xf32>
    %3 = vector.multi_reduction <add>, %0, %cst [0] : vector<32x128xf32> to vector<128xf32>
    %4 = vector.shape_cast %3 : vector<128xf32> to vector<1x128xf32>
    %cst_5 = arith.constant 3.200000e+01 : f32
    %5 = vector.broadcast %cst_5 : f32 to vector<1x128xf32>
    %6 = arith.divf %4, %5 : vector<1x128xf32>
    %7 = vector.broadcast %6 : vector<1x128xf32> to vector<32x128xf32>
    %8 = arith.subf %0, %7 : vector<32x128xf32>
    %9 = arith.mulf %8, %8 : vector<32x128xf32>
    %cst_6 = arith.constant dense<0.000000e+00> : vector<128xf32>
    %10 = vector.multi_reduction <add>, %9, %cst_6 [0] : vector<32x128xf32> to vector<128xf32>
    %11 = vector.shape_cast %10 : vector<128xf32> to vector<1x128xf32>
    %cst_7 = arith.constant 3.200000e+01 : f32
    %12 = vector.broadcast %cst_7 : f32 to vector<1x128xf32>
    %13 = arith.divf %11, %12 : vector<1x128xf32>
    %cst_8 = arith.constant 9.99999974E-6 : f32
    %14 = vector.broadcast %cst_8 : f32 to vector<1x128xf32>
    %15 = arith.addf %13, %14 : vector<1x128xf32>
    %16 = math.rsqrt %15 : vector<1x128xf32>
    %17 = vector.broadcast %16 : vector<1x128xf32> to vector<32x128xf32>
    %18 = arith.mulf %8, %17 : vector<32x128xf32>
    %19 = vector.broadcast %1 : vector<32x1xf32> to vector<32x128xf32>
    %20 = arith.mulf %18, %19 : vector<32x128xf32>
    %21 = vector.broadcast %2 : vector<32x1xf32> to vector<32x128xf32>
    %22 = arith.addf %20, %21 : vector<32x128xf32>
    %c0_9 = arith.constant 0 : index
    %c0_10 = arith.constant 0 : index
    %23 = vector.load %arg3[%c0_9, %c0_10] : memref<96x32xf32, #tpu.memory_space<vmem>>, vector<96x32xf32>
    %cst_11 = arith.constant dense<0.000000e+00> : vector<96x128xf32>
    %24 = tpu.matmul %23, %22, %cst_11 {dimension_numbers = #tpu.dot_dimension_numbers<[1], [0], [0], [1], [0, 0, 1, 1], [], []>} : vector<96x32xf32>, vector<32x128xf32>, vector<96x128xf32> -> vector<96x128xf32>
    %c0_12 = arith.constant 0 : index
    %c0_13 = arith.constant 0 : index
    %25 = vector.load %arg4[%c0_12, %c0_13] : memref<96x1xf32, #tpu.memory_space<vmem>>, vector<96x1xf32>
    %26 = vector.broadcast %25 : vector<96x1xf32> to vector<96x128xf32>
    %27 = arith.addf %24, %26 : vector<96x128xf32>
    %28 = vector.extract_strided_slice %27 {offsets = [0, 0], sizes = [32, 128], strides = [1, 1]} : vector<96x128xf32> to vector<32x128xf32>
    %29 = vector.extract_strided_slice %27 {offsets = [32, 0], sizes = [32, 128], strides = [1, 1]} : vector<96x128xf32> to vector<32x128xf32>
    %30 = vector.extract_strided_slice %27 {offsets = [64, 0], sizes = [32, 128], strides = [1, 1]} : vector<96x128xf32> to vector<32x128xf32>
    %31 = vector.extract_strided_slice %28 {offsets = [0, 0], sizes = [32, 64], strides = [1, 1]} : vector<32x128xf32> to vector<32x64xf32>
    %32 = vector.shape_cast %31 : vector<32x64xf32> to vector<4x8x64xf32>
    %33 = vector.extract_strided_slice %29 {offsets = [0, 0], sizes = [32, 64], strides = [1, 1]} : vector<32x128xf32> to vector<32x64xf32>
    %34 = vector.shape_cast %33 : vector<32x64xf32> to vector<4x8x64xf32>
    %35 = vector.extract_strided_slice %30 {offsets = [0, 0], sizes = [32, 64], strides = [1, 1]} : vector<32x128xf32> to vector<32x64xf32>
    %36 = vector.shape_cast %35 : vector<32x64xf32> to vector<4x8x64xf32>
    "tpu.trace_start"() <{level = 10 : i32, message = "hdq,hdk->hqk"}> : () -> ()
    %cst_14 = arith.constant dense<0.000000e+00> : vector<4x64x64xf32>
    %37 = tpu.matmul %32, %34, %cst_14 {dimension_numbers = #tpu.dot_dimension_numbers<[1], [1], [2], [2], [0, 0, 0, 2, 1, 2], [0], [0]>} : vector<4x8x64xf32>, vector<4x8x64xf32>, vector<4x64x64xf32> -> vector<4x64x64xf32>
    "tpu.trace_stop"() : () -> ()
    %cst_15 = arith.constant dense<0xFF800000> : vector<4x64xf32>
    %38 = vector.multi_reduction <maximumf>, %37, %cst_15 [2] : vector<4x64x64xf32> to vector<4x64xf32>
    %39 = vector.shape_cast %38 : vector<4x64xf32> to vector<4x64x1xf32>
    %40 = vector.broadcast %39 : vector<4x64x1xf32> to vector<4x64x64xf32>
    %41 = arith.subf %37, %40 : vector<4x64x64xf32>
    %42 = math.exp %41 : vector<4x64x64xf32>
    %cst_16 = arith.constant dense<0.000000e+00> : vector<4x64xf32>
    %43 = vector.multi_reduction <add>, %42, %cst_16 [2] : vector<4x64x64xf32> to vector<4x64xf32>
    %44 = vector.shape_cast %43 : vector<4x64xf32> to vector<4x64x1xf32>
    %45 = tpu.reciprocal %44 {approx = true} : vector<4x64x1xf32> -> vector<4x64x1xf32>
    %46 = vector.broadcast %45 : vector<4x64x1xf32> to vector<4x64x64xf32>
    %47 = arith.mulf %42, %46 : vector<4x64x64xf32>
    "tpu.trace_start"() <{level = 10 : i32, message = "hdk,hqk->hdq"}> : () -> ()
    %cst_17 = arith.constant dense<0.000000e+00> : vector<4x8x64xf32>
    %48 = tpu.matmul %36, %47, %cst_17 {dimension_numbers = #tpu.dot_dimension_numbers<[2], [2], [1], [1], [0, 0, 0, 1, 1, 1], [0], [0]>} : vector<4x8x64xf32>, vector<4x64x64xf32>, vector<4x8x64xf32> -> vector<4x8x64xf32>
    "tpu.trace_stop"() : () -> ()
    %49 = vector.shape_cast %48 : vector<4x8x64xf32> to vector<32x64xf32>
    %50 = vector.extract_strided_slice %28 {offsets = [0, 64], sizes = [32, 64], strides = [1, 1]} : vector<32x128xf32> to vector<32x64xf32>
    %51 = vector.shape_cast %50 : vector<32x64xf32> to vector<4x8x64xf32>
    %52 = vector.extract_strided_slice %29 {offsets = [0, 64], sizes = [32, 64], strides = [1, 1]} : vector<32x128xf32> to vector<32x64xf32>
    %53 = vector.shape_cast %52 : vector<32x64xf32> to vector<4x8x64xf32>
    %54 = vector.extract_strided_slice %30 {offsets = [0, 64], sizes = [32, 64], strides = [1, 1]} : vector<32x128xf32> to vector<32x64xf32>
    %55 = vector.shape_cast %54 : vector<32x64xf32> to vector<4x8x64xf32>
    "tpu.trace_start"() <{level = 10 : i32, message = "hdq,hdk->hqk"}> : () -> ()
    %cst_18 = arith.constant dense<0.000000e+00> : vector<4x64x64xf32>
    %56 = tpu.matmul %51, %53, %cst_18 {dimension_numbers = #tpu.dot_dimension_numbers<[1], [1], [2], [2], [0, 0, 0, 2, 1, 2], [0], [0]>} : vector<4x8x64xf32>, vector<4x8x64xf32>, vector<4x64x64xf32> -> vector<4x64x64xf32>
    "tpu.trace_stop"() : () -> ()
    %cst_19 = arith.constant dense<0xFF800000> : vector<4x64xf32>
    %57 = vector.multi_reduction <maximumf>, %56, %cst_19 [2] : vector<4x64x64xf32> to vector<4x64xf32>
    %58 = vector.shape_cast %57 : vector<4x64xf32> to vector<4x64x1xf32>
    %59 = vector.broadcast %58 : vector<4x64x1xf32> to vector<4x64x64xf32>
    %60 = arith.subf %56, %59 : vector<4x64x64xf32>
    %61 = math.exp %60 : vector<4x64x64xf32>
    %cst_20 = arith.constant dense<0.000000e+00> : vector<4x64xf32>
    %62 = vector.multi_reduction <add>, %61, %cst_20 [2] : vector<4x64x64xf32> to vector<4x64xf32>
    %63 = vector.shape_cast %62 : vector<4x64xf32> to vector<4x64x1xf32>
    %64 = tpu.reciprocal %63 {approx = true} : vector<4x64x1xf32> -> vector<4x64x1xf32>
    %65 = vector.broadcast %64 : vector<4x64x1xf32> to vector<4x64x64xf32>
    %66 = arith.mulf %61, %65 : vector<4x64x64xf32>
    "tpu.trace_start"() <{level = 10 : i32, message = "hdk,hqk->hdq"}> : () -> ()
    %cst_21 = arith.constant dense<0.000000e+00> : vector<4x8x64xf32>
    %67 = tpu.matmul %55, %66, %cst_21 {dimension_numbers = #tpu.dot_dimension_numbers<[2], [2], [1], [1], [0, 0, 0, 1, 1, 1], [0], [0]>} : vector<4x8x64xf32>, vector<4x64x64xf32>, vector<4x8x64xf32> -> vector<4x8x64xf32>
    "tpu.trace_stop"() : () -> ()
    %68 = vector.shape_cast %67 : vector<4x8x64xf32> to vector<32x64xf32>
    %69 = tpu.concatenate %49, %68 in 1 : vector<32x64xf32>, vector<32x64xf32> -> vector<32x128xf32>
    %c0_22 = arith.constant 0 : index
    %c0_23 = arith.constant 0 : index
    %70 = vector.load %arg5[%c0_22, %c0_23] : memref<32x32xf32, #tpu.memory_space<vmem>>, vector<32x32xf32>
    %cst_24 = arith.constant dense<0.000000e+00> : vector<32x128xf32>
    %71 = tpu.matmul %70, %69, %cst_24 {dimension_numbers = #tpu.dot_dimension_numbers<[1], [0], [0], [1], [0, 0, 1, 1], [], []>} : vector<32x32xf32>, vector<32x128xf32>, vector<32x128xf32> -> vector<32x128xf32>
    %c0_25 = arith.constant 0 : index
    %c0_26 = arith.constant 0 : index
    %72 = vector.load %arg6[%c0_25, %c0_26] : memref<32x1xf32, #tpu.memory_space<vmem>>, vector<32x1xf32>
    %73 = vector.broadcast %72 : vector<32x1xf32> to vector<32x128xf32>
    %74 = arith.addf %71, %73 : vector<32x128xf32>
    %75 = arith.addf %74, %0 : vector<32x128xf32>
    %c0_27 = arith.constant 0 : index
    %c0_28 = arith.constant 0 : index
    %76 = vector.load %arg7[%c0_27, %c0_28] : memref<32x1xf32, #tpu.memory_space<vmem>>, vector<32x1xf32>
    %c0_29 = arith.constant 0 : index
    %c0_30 = arith.constant 0 : index
    %77 = vector.load %arg8[%c0_29, %c0_30] : memref<32x1xf32, #tpu.memory_space<vmem>>, vector<32x1xf32>
    %cst_31 = arith.constant dense<0.000000e+00> : vector<128xf32>
    %78 = vector.multi_reduction <add>, %75, %cst_31 [0] : vector<32x128xf32> to vector<128xf32>
    %79 = vector.shape_cast %78 : vector<128xf32> to vector<1x128xf32>
    %cst_32 = arith.constant 3.200000e+01 : f32
    %80 = vector.broadcast %cst_32 : f32 to vector<1x128xf32>
    %81 = arith.divf %79, %80 : vector<1x128xf32>
    %82 = vector.broadcast %81 : vector<1x128xf32> to vector<32x128xf32>
    %83 = arith.subf %75, %82 : vector<32x128xf32>
    %84 = arith.mulf %83, %83 : vector<32x128xf32>
    %cst_33 = arith.constant dense<0.000000e+00> : vector<128xf32>
    %85 = vector.multi_reduction <add>, %84, %cst_33 [0] : vector<32x128xf32> to vector<128xf32>
    %86 = vector.shape_cast %85 : vector<128xf32> to vector<1x128xf32>
    %cst_34 = arith.constant 3.200000e+01 : f32
    %87 = vector.broadcast %cst_34 : f32 to vector<1x128xf32>
    %88 = arith.divf %86, %87 : vector<1x128xf32>
    %cst_35 = arith.constant 9.99999974E-6 : f32
    %89 = vector.broadcast %cst_35 : f32 to vector<1x128xf32>
    %90 = arith.addf %88, %89 : vector<1x128xf32>
    %91 = math.rsqrt %90 : vector<1x128xf32>
    %92 = vector.broadcast %91 : vector<1x128xf32> to vector<32x128xf32>
    %93 = arith.mulf %83, %92 : vector<32x128xf32>
    %94 = vector.broadcast %76 : vector<32x1xf32> to vector<32x128xf32>
    %95 = arith.mulf %93, %94 : vector<32x128xf32>
    %96 = vector.broadcast %77 : vector<32x1xf32> to vector<32x128xf32>
    %97 = arith.addf %95, %96 : vector<32x128xf32>
    %c0_36 = arith.constant 0 : index
    %c0_37 = arith.constant 0 : index
    %98 = vector.load %arg9[%c0_36, %c0_37] : memref<32x32xf32, #tpu.memory_space<vmem>>, vector<32x32xf32>
    %cst_38 = arith.constant dense<0.000000e+00> : vector<32x128xf32>
    %99 = tpu.matmul %98, %97, %cst_38 {dimension_numbers = #tpu.dot_dimension_numbers<[1], [0], [0], [1], [0, 0, 1, 1], [], []>} : vector<32x32xf32>, vector<32x128xf32>, vector<32x128xf32> -> vector<32x128xf32>
    %c0_39 = arith.constant 0 : index
    %c0_40 = arith.constant 0 : index
    %100 = vector.load %arg10[%c0_39, %c0_40] : memref<32x1xf32, #tpu.memory_space<vmem>>, vector<32x1xf32>
    %101 = vector.broadcast %100 : vector<32x1xf32> to vector<32x128xf32>
    %102 = arith.addf %99, %101 : vector<32x128xf32>
    %cst_41 = arith.constant 5.000000e-01 : f32
    %103 = vector.broadcast %cst_41 : f32 to vector<32x128xf32>
    %104 = arith.mulf %103, %102 : vector<32x128xf32>
    %cst_42 = arith.constant 0.707106769 : f32
    %105 = vector.broadcast %cst_42 : f32 to vector<32x128xf32>
    %106 = arith.mulf %102, %105 : vector<32x128xf32>
    %107 = math.erf %106 : vector<32x128xf32>
    %cst_43 = arith.constant 1.000000e+00 : f32
    %108 = vector.broadcast %cst_43 : f32 to vector<32x128xf32>
    %109 = arith.addf %108, %107 : vector<32x128xf32>
    %110 = arith.mulf %104, %109 : vector<32x128xf32>
    %c0_44 = arith.constant 0 : index
    %c0_45 = arith.constant 0 : index
    %111 = vector.load %arg11[%c0_44, %c0_45] : memref<32x32xf32, #tpu.memory_space<vmem>>, vector<32x32xf32>
    %cst_46 = arith.constant dense<0.000000e+00> : vector<32x128xf32>
    %112 = tpu.matmul %111, %110, %cst_46 {dimension_numbers = #tpu.dot_dimension_numbers<[1], [0], [0], [1], [0, 0, 1, 1], [], []>} : vector<32x32xf32>, vector<32x128xf32>, vector<32x128xf32> -> vector<32x128xf32>
    %c0_47 = arith.constant 0 : index
    %c0_48 = arith.constant 0 : index
    %113 = vector.load %arg12[%c0_47, %c0_48] : memref<32x1xf32, #tpu.memory_space<vmem>>, vector<32x1xf32>
    %114 = vector.broadcast %113 : vector<32x1xf32> to vector<32x128xf32>
    %115 = arith.addf %112, %114 : vector<32x128xf32>
    %116 = arith.addf %115, %75 : vector<32x128xf32>
    %c0_49 = arith.constant 0 : index
    %c0_50 = arith.constant 0 : index
    %117 = vector.load %arg13[%c0_49, %c0_50] : memref<32x128xf32, #tpu.memory_space<vmem>>, vector<32x128xf32>
    tpu.vector_store %arg13[%c0_49, %c0_50], %116 {strides = array<i32>} : memref<32x128xf32, #tpu.memory_space<vmem>>, vector<32x128xf32>,
    return
  }
}

</mosaic_0001>

<bundles_post_ra>
// kernel: tpu_custom_call.1
= control target key start
LH: loop header
LB: loop body
LE: loop exit
PB: predicated region body
PF: predicated region fallthrough
CT: control target
= control target key end

     0   :  { %v4881_v2 = vmov 0   ;;  %s6198_s0 = inlined_call_operand.vmem [shape: f32[32,128], index: 0, kind: input, shape index: {}]   ;;  %s6199_s1 = inlined_call_operand.vmem [shape: f32[32,1], index: 1, kind: input, shape index: {}]   ;;  %s6200_s2 = inlined_call_operand.vmem [shape: f32[32,1], index: 2, kind: input, shape index: {}]   ;;  %s6201_s3 = inlined_call_operand.vmem [shape: f32[96,32], index: 3, kind: input, shape index: {}]   ;;  %s6202_s4 = inlined_call_operand.vmem [shape: f32[96,1], index: 4, kind: input, shape index: {}]   ;;  %s6203_s5 = inlined_call_operand.vmem [shape: f32[32,32], index: 5, kind: input, shape index: {}]   ;;  %s6204_s6 = inlined_call_operand.vmem [shape: f32[32,1], index: 6, kind: input, shape index: {}]   ;;  %s6205_s7 = inlined_call_operand.vmem [shape: f32[32,1], index: 7, kind: input, shape index: {}]   ;;  %s6206_s8 = inlined_call_operand.vmem [shape: f32[32,1], index: 8, kind: input, shape index: {}]   ;;  %s6207_s9 = inlined_call_operand.vmem [shape: f32[32,32], index: 9, kind: input, shape index: {}]   ;;  %s6208_s10 = inlined_call_operand.vmem [shape: f32[32,1], index: 10, kind: input, shape index: {}]   ;;  %s6209_s11 = inlined_call_operand.vmem [shape: f32[32,32], index: 11, kind: input, shape index: {}]   ;;  %s6210_s12 = inlined_call_operand.vmem [shape: f32[32,1], index: 12, kind: input, shape index: {}]   ;;  %s6211_s13 = inlined_call_operand.hbm [shape: f32[32,128], index: 13, kind: output, shape index: {}]  }
   0x1   :  { %v53_v0 = vld [vmem:[%s6200_s2] sm:$0xff]  ;;  %4574 = vset.pattern.permute.xlu1 %v4881_v2  ;;  %4573 = vset.pattern.permute.xlu0 %v4881_v2  ;;  %v54_v3 = vld [vmem:[%s6200_s2 + $0x8] sm:$0xff] }
   0x2   :  { %v49_v1 = vld [vmem:[%s6199_s1] sm:$0xff]  ;;  %118 = vperm.xlu1 %4574, %v53_v0   ;;  %v50_v4 = vld [vmem:[%s6199_s1 + $0x8] sm:$0xff] }
   0x3   :  { %94 = vperm.xlu0 %4573, %v49_v1  }
   0x6   :  { %123 = vperm.xlu1 %4574, %v54_v3  }
   0x7   :  { %99 = vperm.xlu0 %4573, %v50_v4  }
   0x8   :  { %18 = vsyncpa [#allocation3], 0  ;;  %v52_v5 = vld [vmem:[%s6199_s1 + $0x18] sm:$0xff]  ;;  %v51_v6 = vld [vmem:[%s6199_s1 + $0x10] sm:$0xff]  ;;  %vm224_vm0 = vcmask 261120   ;;  %s4882_s16 = smov 64  }
   0x9   :  { %v56_v7 = vld [vmem:[%s6200_s2 + $0x18] sm:$0xff]  ;;  %v55_v8 = vld [vmem:[%s6200_s2 + $0x10] sm:$0xff]  ;;  %v153_v9 = vld [vmem:[%s6202_s4 + $0x8] sm:$0xff]  ;;  %vm418_vm1 = vcmask 64512   ;;  %vm1031_vm2 = vcmask 523264   ;;  %vm4884_vm3 = vmmov 0  }
   0xa   :  { %109 = vperm.xlu1 %4574, %v52_v5   ;;  %v152_v10 = vld [vmem:[%s6202_s4] sm:$0xff]  ;;  %v154_v11 = vld [vmem:[%s6202_s4 + $0x10] sm:$0xff]  ;;  %v46_v15 = vld [vmem:[%s6198_s0 + $0x8] sm:$0xff]  ;;  %s4886_s21 = smov [#allocation2]  }
   0xb   :  { %104 = vperm.xlu0 %4573, %v51_v6   ;;  %v156_v12 = vld [vmem:[%s6202_s4 + $0x20] sm:$0xff]  ;;  %v157_v16 = vld [vmem:[%s6202_s4 + $0x28] sm:$0xff]  ;;  %v155_v17 = vld [vmem:[%s6202_s4 + $0x18] sm:$0xff]  ;;  %s3714_s22 = sshll.u32 %s4886_s21, 4  ;;  %s3715_s22 = int_to_ptr.vmem [resolvable:$true] %s3714_s22 }
   0xc   :  { %v140_v13 = vld [vmem:[%s6201_s3] sm:$0xff]  ;;  %v47_v19 = vld [vmem:[%s6198_s0 + $0x10] sm:$0xff]  ;;  %v48_v22 = vld [vmem:[%s6198_s0 + $0x18] sm:$0xff]  ;;  %p4862_p1 = scmp.lt.s32.totalorder %s3715_s22, %s3715_s22 }
   0xd   :  { %v45_v14 = vld [vmem:[%s6198_s0] sm:$0xff]  ;;  %4077 = vmatprep.mubr.msk.f32.mxu0 %vm224_vm0, %v140_v13  ;;  %v158_v20 = vld [vmem:[%s6202_s4 + $0x30] sm:$0xff]  ;;  %v159_v23 = vld [vmem:[%s6202_s4 + $0x38] sm:$0xff] }
   0xe   :  { %133 = vperm.xlu1 %4574, %v56_v7   ;;  %v57_v18 = vadd.f32 %v46_v15, %v45_v14  ;;  %v144_v13 = vld [vmem:[%s6201_s3 + $0x20] sm:$0xff]  ;;  %vm5464_vm4 = vmpackc.low %vm1031_vm2, %vm1031_vm2 }
   0xf   :  { %128 = vperm.xlu0 %4573, %v55_v8  }
  0x10   :  { %v58_v21 = vadd.f32 %v57_v18, %v47_v19  ;;  %v149_v18 = vld [vmem:[%s6201_s3 + $0x48] sm:$0xff] }
  0x12   :  { %171 = vperm.xlu1 %4574, %v153_v9   ;;  %v59_v24 = vadd.f32 %v58_v21, %v48_v22 }
  0x13   :  { %166 = vperm.xlu0 %4573, %v152_v10   ;;  %v141_v10 = vld [vmem:[%s6201_s3 + $0x8] sm:$0xff] }
  0x14   :  { %v60_v25 = vrot.slane %v59_v24, 4 }
  0x16   :  { %176 = vperm.xlu1 %4574, %v154_v11   ;;  %v61_v26 = vadd.f32 %v60_v25, %v59_v24  ;;  %v142_v11 = vld [vmem:[%s6201_s3 + $0x10] sm:$0xff] }
  0x17   :  { %186 = vperm.xlu0 %4573, %v156_v12   ;;  %v143_v12 = vld [vmem:[%s6201_s3 + $0x18] sm:$0xff] }
  0x18   :  { %v62_v27 = vrot.slane %v61_v26, 2 }
  0x1a   :  { %191 = vperm.xlu1 %4574, %v157_v16   ;;  %v63_v28 = vadd.f32 %v62_v27, %v61_v26  ;;  %v147_v16 = vld [vmem:[%s6201_s3 + $0x38] sm:$0xff] }
  0x1b   :  { %181 = vperm.xlu0 %4573, %v155_v17   ;;  %v148_v17 = vld [vmem:[%s6201_s3 + $0x40] sm:$0xff] }
  0x1c   :  { %v64_v29 = vrot.slane %v63_v28, 1 }
  0x1e   :  { %196 = vperm.xlu1 %4574, %v158_v20   ;;  %v65_v30 = vadd.f32 %v64_v29, %v63_v28  ;;  %v151_v20 = vld [vmem:[%s6201_s3 + $0x58] sm:$0xff] }
  0x20   :  { %v67_v31 = vmul.f32 0.03125, %v65_v30 }
  0x22   :  { %201 = vperm.xlu1 %4574, %v159_v23   ;;  %v68_v32 = vsub.f32 %v45_v14, %v67_v31  ;;  %v69_v33 = vsub.f32 %v46_v15, %v67_v31  ;;  %v70_v34 = vsub.f32 %v47_v19, %v67_v31  ;;  %v71_v37 = vsub.f32 %v48_v22, %v67_v31  ;;  %v145_v14 = vld [vmem:[%s6201_s3 + $0x28] sm:$0xff]  ;;  %v146_v15 = vld [vmem:[%s6201_s3 + $0x30] sm:$0xff] }
  0x23   :  { %v150_v19 = vld [vmem:[%s6201_s3 + $0x50] sm:$0xff] }
  0x24   :  { %v72_v35 = vmul.f32 %v68_v32, %v68_v32  ;;  %v73_v36 = vmul.f32 %v69_v33, %v69_v33  ;;  %v74_v38 = vmul.f32 %v70_v34, %v70_v34  ;;  %v75_v40 = vmul.f32 %v71_v37, %v71_v37 }
  0x26   :  { %v76_v39 = vadd.f32 %v73_v36, %v72_v35 }
  0x28   :  { %v77_v41 = vadd.f32 %v76_v39, %v74_v38 }
  0x2a   :  { %v78_v42 = vadd.f32 %v77_v41, %v75_v40 }
  0x2c   :  { %v79_v43 = vrot.slane %v78_v42, 4 }
  0x2e   :  { %v80_v44 = vadd.f32 %v79_v43, %v78_v42  ;;  %v160_v43 = vld [vmem:[%s6202_s4 + $0x40] sm:$0xff] }
  0x30   :  { %v81_v45 = vrot.slane %v80_v44, 2 }
  0x32   :  { %v82_v46 = vadd.f32 %v81_v45, %v80_v44 }
  0x34   :  { %v83_v47 = vrot.slane %v82_v46, 1 }
  0x36   :  { %v84_v48 = vadd.f32 %v83_v47, %v82_v46  ;;  %v162_v46 = vld [vmem:[%s6202_s4 + $0x50] sm:$0xff] }
  0x38   :  { %v85_v49 = vmul.f32 0.03125, %v84_v48 }
  0x3a   :  { %v86_v50 = vadd.f32 1e-05, %v85_v49  ;;  %v163_v49 = vld [vmem:[%s6202_s4 + $0x58] sm:$0xff] }
  0x3c   :  { %4585 = vrsqrt.f32 %v86_v50  ;;  %v161_v50 = vld [vmem:[%s6202_s4 + $0x48] sm:$0xff] }
  0x46   :  { %v4586_v51 = vpop.eup %4585 }
  0x47   :  { %v88_v52 = vmul.f32 %v4586_v51, %v68_v32  ;;  %v89_v55 = vmul.f32 %v4586_v51, %v69_v33  ;;  %v91_v60 = vmul.f32 %v4586_v51, %v71_v37  ;;  %v90_v61 = vmul.f32 %v4586_v51, %v70_v34 }
  0x81   :  { %v119_v53 = vpop.permute.xlu1 %118 }
  0x82   :  { %v95_v54 = vpop.permute.xlu0 %94 }
  0x83   :  { %v112_v56 = vmul.f32 %v95_v54, %v88_v52 }
  0x85   :  { %v124_v57 = vpop.permute.xlu1 %123  ;;  %v136_v62 = vadd.f32 %v119_v53, %v112_v56 }
  0x86   :  { %v100_v58 = vpop.permute.xlu0 %99 }
  0x87   :  { %v113_v59 = vmul.f32 %v100_v58, %v89_v55 }
  0x89   :  { %v137_v63 = vadd.f32 %v124_v57, %v113_v59  ;;  %v110_v0 = vpop.permute.xlu1 %109 }
  0x8a   :  { %v105_v1 = vpop.permute.xlu0 %104  ;;  %v115_v3 = vmul.f32 %v110_v0, %v91_v60 }
  0x8b   :  { %v4401_v2 = vpack.c.bf16 %v137_v63, %v136_v62  ;;  %v114_v4 = vmul.f32 %v105_v1, %v90_v61 }
  0x8d   :  { %4402 = vmatprep.subr.bf16.mxu0 %v4401_v2  ;;  %v134_v5 = vpop.permute.xlu1 %133 }
  0x8e   :  { %v129_v6 = vpop.permute.xlu0 %128  ;;  %4404 = vmatpush3.bf16.msra.mxu0 %v4401_v2  ;;  %v139_v7 = vadd.f32 %v134_v5, %v115_v3 }
  0x8f   :  { %v138_v8 = vadd.f32 %v129_v6, %v114_v4 }
  0x91   :  { %v4405_v9 = vpack.c.bf16 %v139_v7, %v138_v8  ;;  %v172_v21 = vpop.permute.xlu1 %171 }
  0x92   :  { %v167_v22 = vpop.permute.xlu0 %166 }
  0x93   :  { %4406 = vmatprep.subr.bf16.mxu0 %v4405_v9 }
  0x94   :  { %4408 = vmatpush3.bf16.msra.mxu0 %v4405_v9 }
  0x95   :  { %v177_v24 = vpop.permute.xlu1 %176 }
  0x96   :  { %v187_v32 = vpop.permute.xlu0 %186 }
  0x97   :  { %4078 = vmatmul.mubr.msk.f32.vlgmr.msra.gmra.mrb[0].mxu0 %vm224_vm0, %v141_v10 }
  0x98   :  { %4080 = vmatprep.mubr.msk.f32.mxu0 %vm224_vm0, %v142_v11 }
  0x99   :  { %v192_v30 = vpop.permute.xlu1 %191 }
  0x9a   :  { %v182_v40 = vpop.permute.xlu0 %181 }
  0x9b   :  { %4081 = vmatmul.mubr.msk.f32.gmra.mrb[2].mxu0 %vm224_vm0, %v143_v12 }
  0x9c   :  { %4083 = vmatprep.mubr.msk.f32.mxu0 %vm224_vm0, %v144_v13 }
  0x9d   :  { %v197_v37 = vpop.permute.xlu1 %196 }
  0x9f   :  { %4084 = vmatmul.mubr.msk.f32.gmra.mrb[4].mxu0 %vm224_vm0, %v145_v14 }
  0xa0   :  { %4086 = vmatprep.mubr.msk.f32.mxu0 %vm224_vm0, %v146_v15 }
  0xa1   :  { %v202_v51 = vpop.permute.xlu1 %201 }
  0xa3   :  { %4087 = vmatmul.mubr.msk.f32.gmra.mrb[6].mxu0 %vm224_vm0, %v147_v16 }
  0xa4   :  { %4089 = vmatprep.mubr.msk.f32.mxu0 %vm224_vm0, %v148_v17 }
  0xa7   :  { %4090 = vmatmul.mubr.msk.f32.gmra.mrb[8].mxu0 %vm224_vm0, %v149_v18 }
  0xa8   :  { %4092 = vmatprep.mubr.msk.f32.mxu0 %vm224_vm0, %v150_v19 }
  0xab   :  { %4093 = vmatmul.mubr.msk.f32.gmra.mrb[10].mxu0 %vm224_vm0, %v151_v20 }
 0x16a   :  { %v4079_v23 = vpop.f32.mrb[0].mxu0 }
 0x16b   :  { %v333_v25 = vadd.f32 %v4079_v23, %v172_v21  ;;  %v327_v26 = vpop.f32.mrb[1].mxu0 }
 0x16c   :  { %v328_v27 = vadd.f32 %v327_v26, %v167_v22 }
 0x16d   :  { %548 = vxpose.xlu1.b32.start.end [1/1] (short) (narrow) %v333_v25, 64 }
 0x16e   :  { %v4082_v28 = vpop.f32.mrb[2].mxu0  ;;  %386 = vxpose.xlu0.b32.start.end [1/1] (short) (narrow) %v328_v27, 64 }
 0x16f   :  { %v337_v29 = vpop.f32.mrb[3].mxu0  ;;  %v343_v41 = vadd.f32 %v4082_v28, %v182_v40 }
 0x170   :  { %v338_v42 = vadd.f32 %v337_v29, %v177_v24 }
 0x172   :  { %v4085_v31 = vpop.f32.mrb[4].mxu0 }
 0x173   :  { %v347_v33 = vpop.f32.mrb[5].mxu0  ;;  %v5069_v35 = vadd.f32 %v4085_v31, %v192_v30 }
 0x174   :  { %v5067_v34 = vadd.f32 %v347_v33, %v187_v32 }
 0x176   :  { %v4088_v36 = vpop.f32.mrb[6].mxu0  ;;  %4095 = vmatprep.subr.mxu1 %v5067_v34 }
 0x177   :  { %v357_v38 = vpop.f32.mrb[7].mxu0  ;;  %4096 = vmatpush3.msra.mxu1 %v5067_v34  ;;  %v5103_v56 = vadd.f32 %v4088_v36, %v202_v51 }
 0x178   :  { %v5073_v39 = vadd.f32 %v357_v38, %v197_v37  ;;  %4109 = vmatprep.subr.mxu1 %v5069_v35 }
 0x17a   :  { %4123 = vmatprep.subr.mxu0 %v5073_v39  ;;  %v5081_v44 = vpop.f32.mrb[8].mxu0 }
 0x17b   :  { %4124 = vmatpush3.msra.mxu0 %v5073_v39  ;;  %v5083_v45 = vpop.f32.mrb[9].mxu0 }
 0x17e   :  { %v5089_v47 = vpop.f32.mrb[10].mxu0 }
 0x17f   :  { %v5091_v48 = vpop.f32.mrb[11].mxu0 }
 0x18a   :  { %870 = vxpose.xlu1.b32.start.end [1/1] (short) (narrow) %v343_v41, 64 }
 0x18b   :  { %709 = vxpose.xlu0.b32.start.end [1/1] (short) (narrow) %v338_v42, 64 }
 0x1c4   :  { %206 = vperm.xlu1 %4574, %v160_v43  }
 0x1c8   :  { %1773 = vrot.lane.b32.xlu1 %v328_v27, %s4882_s16 }
 0x1cc   :  { %216 = vperm.xlu1 %4574, %v162_v46  }
 0x1d0   :  { %221 = vperm.xlu1 %4574, %v163_v49   ;;  %211 = vperm.xlu0 %4573, %v161_v50  }
 0x1d4   :  { %2280 = vrot.lane.b32.xlu1 %v343_v41, %s4882_s16  ;;  %1942 = vrot.lane.b32.xlu0 %v333_v25, %s4882_s16 }
 0x1d8   :  { %2111 = vrot.lane.b32.xlu0 %v338_v42, %s4882_s16 }
 0x1ed   :  { %v564_v52 = vpop.trf.xlu1 }
 0x1ee   :  { %v402_v53 = vpop.trf.xlu0 }
 0x1ef   :  { %4097 = vmatprep.mubr.msk.f32.mxu1 %vm418_vm1, %v402_v53 }
 0x1f1   :  { %v565_v54 = vpop.trf.xlu1 }
 0x1f2   :  { %v403_v55 = vpop.trf.xlu0 }
 0x1f3   :  { %4098 = vmatmul.mubr.msk.f32.vlgmr.msra.gmra.mrb[0].mxu1 %vm418_vm1, %v403_v55 }
 0x1f4   :  { %4110 = vmatpush3.msra.mxu1 %v5069_v35 }
 0x1f5   :  { %4137 = vmatprep.subr.mxu1 %v5103_v56  ;;  %v566_v57 = vpop.trf.xlu1 }
 0x1f6   :  { %v404_v58 = vpop.trf.xlu0 }
 0x1f7   :  { %4100 = vmatprep.mubr.msk.f32.mxu1 %vm418_vm1, %v404_v58 }
 0x1f9   :  { %v567_v59 = vpop.trf.xlu1 }
 0x1fa   :  { %v405_v60 = vpop.trf.xlu0 }
 0x1fb   :  { %4101 = vmatmul.mubr.msk.f32.gmra.mrb[2].mxu1 %vm418_vm1, %v405_v60 }
 0x1fd   :  { %v568_v61 = vpop.trf.xlu1 }
 0x1fe   :  { %v406_v62 = vpop.trf.xlu0 }
 0x1ff   :  { %4103 = vmatprep.mubr.msk.f32.mxu1 %vm418_vm1, %v406_v62 }
 0x201   :  { %v569_v63 = vpop.trf.xlu1 }
 0x202   :  { %v407_v0 = vpop.trf.xlu0 }
 0x203   :  { %4104 = vmatmul.mubr.msk.f32.gmra.mrb[4].mxu1 %vm418_vm1, %v407_v0 }
 0x205   :  { %v570_v1 = vpop.trf.xlu1 }
 0x206   :  { %v408_v2 = vpop.trf.xlu0 }
 0x207   :  { %4106 = vmatprep.mubr.msk.f32.mxu1 %vm418_vm1, %v408_v2 }
 0x209   :  { %v571_v3 = vpop.trf.xlu1 }
 0x20a   :  { %v409_v4 = vpop.trf.xlu0 }
 0x20b   :  { %4107 = vmatmul.mubr.msk.f32.gmra.mrb[6].mxu1 %vm418_vm1, %v409_v4 }
 0x20c   :  { %4111 = vmatprep.mubr.msk.f32.mxu1 %vm418_vm1, %v564_v52 }
 0x20d   :  { %v886_v5 = vpop.trf.xlu1 }
 0x20e   :  { %v725_v6 = vpop.trf.xlu0 }
 0x20f   :  { %4112 = vmatmul.mubr.msk.f32.vlgmr.msra.gmra.mrb[8].mxu1 %vm418_vm1, %v565_v54  ;;  %4125 = vmatprep.mubr.msk.f32.mxu0 %vm418_vm1, %v725_v6 }
 0x210   :  { %4138 = vmatpush3.msra.mxu1 %v5103_v56  ;;  %4114 = vmatprep.mubr.msk.f32.mxu1 %vm418_vm1, %v566_v57 }
 0x211   :  { %v887_v7 = vpop.trf.xlu1 }
 0x212   :  { %v726_v8 = vpop.trf.xlu0 }
 0x213   :  { %4126 = vmatmul.mubr.msk.f32.vlgmr.msra.gmra.mrb[12].mxu0 %vm418_vm1, %v726_v8  ;;  %4115 = vmatmul.mubr.msk.f32.gmra.mrb[10].mxu1 %vm418_vm1, %v567_v59 }
 0x214   :  { %4117 = vmatprep.mubr.msk.f32.mxu1 %vm418_vm1, %v568_v61 }
 0x215   :  { %v888_v9 = vpop.trf.xlu1 }
 0x216   :  { %v727_v10 = vpop.trf.xlu0 }
 0x217   :  { %4128 = vmatprep.mubr.msk.f32.mxu0 %vm418_vm1, %v727_v10  ;;  %4118 = vmatmul.mubr.msk.f32.gmra.mrb[12].mxu1 %vm418_vm1, %v569_v63 }
 0x218   :  { %4120 = vmatprep.mubr.msk.f32.mxu1 %vm418_vm1, %v570_v1 }
 0x219   :  { %v889_v11 = vpop.trf.xlu1 }
 0x21a   :  { %v728_v12 = vpop.trf.xlu0 }
 0x21b   :  { %4129 = vmatmul.mubr.msk.f32.gmra.mrb[14].mxu0 %vm418_vm1, %v728_v12  ;;  %4121 = vmatmul.mubr.msk.f32.gmra.mrb[14].mxu1 %vm418_vm1, %v571_v3 }
 0x21c   :  { %4139 = vmatprep.mubr.msk.f32.mxu1 %vm418_vm1, %v886_v5 }
 0x21d   :  { %v890_v13 = vpop.trf.xlu1 }
 0x21e   :  { %v729_v14 = vpop.trf.xlu0 }
 0x21f   :  { %4131 = vmatprep.mubr.msk.f32.mxu0 %vm418_vm1, %v729_v14  ;;  %4140 = vmatmul.mubr.msk.f32.vlgmr.msra.gmra.mrb[16].mxu1 %vm418_vm1, %v887_v7 }
 0x220   :  { %4142 = vmatprep.mubr.msk.f32.mxu1 %vm418_vm1, %v888_v9 }
 0x221   :  { %v891_v15 = vpop.trf.xlu1 }
 0x222   :  { %v730_v16 = vpop.trf.xlu0 }
 0x223   :  { %4132 = vmatmul.mubr.msk.f32.gmra.mrb[16].mxu0 %vm418_vm1, %v730_v16  ;;  %4143 = vmatmul.mubr.msk.f32.gmra.mrb[18].mxu1 %vm418_vm1, %v889_v11 }
 0x224   :  { %4145 = vmatprep.mubr.msk.f32.mxu1 %vm418_vm1, %v890_v13 }
 0x225   :  { %v892_v17 = vpop.trf.xlu1 }
 0x226   :  { %v731_v18 = vpop.trf.xlu0 }
 0x227   :  { %4134 = vmatprep.mubr.msk.f32.mxu0 %vm418_vm1, %v731_v18  ;;  %4146 = vmatmul.mubr.msk.f32.gmra.mrb[20].mxu1 %vm418_vm1, %v891_v15 }
 0x228   :  { %4148 = vmatprep.mubr.msk.f32.mxu1 %vm418_vm1, %v892_v17 }
 0x229   :  { %v893_v20 = vpop.trf.xlu1 }
 0x22a   :  { %v732_v19 = vpop.trf.xlu0 }
 0x22b   :  { %4135 = vmatmul.mubr.msk.f32.gmra.mrb[18].mxu0 %vm418_vm1, %v732_v19  ;;  %4149 = vmatmul.mubr.msk.f32.gmra.mrb[22].mxu1 %vm418_vm1, %v893_v20 }
 0x243   :  { %v207_v21 = vpop.permute.xlu1 %206 }
 0x244   :  { %v5140_v22 = vadd.f32 %v5083_v45, %v207_v21 }
 0x247   :  { %v5142_v23 = vpop.permute.xlu1 %1773 }
 0x24b   :  { %v217_v24 = vpop.permute.xlu1 %216 }
 0x24c   :  { %v5145_v25 = vadd.f32 %v5091_v48, %v217_v24 }
 0x24f   :  { %v212_v26 = vpop.permute.xlu0 %211 }
 0x250   :  { %v5148_v27 = vadd.f32 %v5081_v44, %v212_v26 }
 0x2c6   :  { %v5150_v28 = vpop.f32.mrb[0].mxu1 }
 0x2c7   :  { %v5152_v29 = vpop.f32.mrb[1].mxu1  ;;  %v1035_v30 = vsel %vm1031_vm2, %v5150_v28, -inf }
 0x2c8   :  { %1036 = vmax.xlane.f32.xlu1 %v1035_v30  ;;  %v1032_v31 = vsel %vm1031_vm2, %v5152_v29, -inf }
 0x2c9   :  { %1033 = vmax.xlane.f32.xlu0 %v1032_v31 }
 0x2ce   :  { %v5158_v32 = vpop.f32.mrb[2].mxu1 }
 0x2cf   :  { %v5160_v33 = vpop.f32.mrb[3].mxu1  ;;  %v1041_v51 = vsel %vm1031_vm2, %v5158_v32, -inf }
 0x2d0   :  { %v1038_v57 = vsel %vm1031_vm2, %v5160_v33, -inf }
 0x2d6   :  { %v5162_v36 = vpop.f32.mrb[4].mxu1 }
 0x2d7   :  { %v5164_v37 = vpop.f32.mrb[5].mxu1  ;;  %v1047_v3 = vsel %vm1031_vm2, %v5162_v36, -inf }
 0x2d8   :  { %v1044_v63 = vsel %vm1031_vm2, %v5164_v37, -inf }
 0x2de   :  { %v5166_v38 = vpop.f32.mrb[6].mxu1 }
 0x2df   :  { %v5168_v40 = vpop.f32.mrb[7].mxu1  ;;  %v1053_v12 = vsel %vm1031_vm2, %v5166_v38, -inf }
 0x2e0   :  { %v1050_v9 = vsel %vm1031_vm2, %v5168_v40, -inf }
 0x2e2   :  { %v5170_v41 = vpop.f32.mrb[8].mxu1 }
 0x2e3   :  { %v5172_v42 = vpop.f32.mrb[9].mxu1  ;;  %v1059_v15 = vsel %vm1031_vm2, %v5170_v41, -inf }
 0x2e4   :  { %v1056_v17 = vsel %vm1031_vm2, %v5172_v42, -inf }
 0x2e6   :  { %v5174_v43 = vpop.f32.mrb[12].mxu0  ;;  %v5176_v44 = vpop.f32.mrb[10].mxu1 }
 0x2e7   :  { %v5178_v45 = vpop.f32.mrb[13].mxu0  ;;  %v1083_v46 = vsel %vm1031_vm2, %v5174_v43, -inf  ;;  %v5182_v48 = vpop.f32.mrb[11].mxu1 }
 0x2e8   :  { %1084 = vmax.xlane.f32.xlu0 %v1083_v46  ;;  %v1080_v49 = vsel %vm1031_vm2, %v5178_v45, -inf  ;;  %v1062_v19 = vsel %vm1031_vm2, %v5182_v48, -inf  ;;  %v5272_v46 = vpop.permute.xlu1 %221 }
 0x2e9   :  { %1081 = vmax.xlane.f32.xlu1 %v1080_v49 }
 0x2ea   :  { %v5186_v50 = vpop.f32.mrb[12].mxu1 }
 0x2eb   :  { %v5190_v52 = vpop.f32.mrb[13].mxu1  ;;  %v1071_v26 = vsel %vm1031_vm2, %v5186_v50, -inf }
 0x2ec   :  { %1042 = vmax.xlane.f32.xlu0 %v1041_v51  ;;  %v1068_v20 = vsel %vm1031_vm2, %v5190_v52, -inf  ;;  %v5276_v51 = vpop.permute.xlu0 %1942 }
 0x2ee   :  { %v5192_v53 = vpop.f32.mrb[14].mxu0  ;;  %v5194_v54 = vpop.f32.mrb[14].mxu1 }
 0x2ef   :  { %v5196_v55 = vpop.f32.mrb[15].mxu0  ;;  %v5200_v58 = vpop.f32.mrb[15].mxu1  ;;  %v1089_v60 = vsel %vm1031_vm2, %v5192_v53, -inf  ;;  %v1077_v31 = vsel %vm1031_vm2, %v5194_v54, -inf }
 0x2f0   :  { %1039 = vmax.xlane.f32.xlu0 %v1038_v57  ;;  %v1086_v59 = vsel %vm1031_vm2, %v5196_v55, -inf  ;;  %v1074_v21 = vsel %vm1031_vm2, %v5200_v58, -inf }
 0x2f1   :  { %1087 = vmax.xlane.f32.xlu1 %v1086_v59 }
 0x2f2   :  { %v5206_v61 = vpop.f32.mrb[16].mxu1 }
 0x2f3   :  { %v5208_v62 = vpop.f32.mrb[17].mxu1  ;;  %v1107_v57 = vsel %vm1031_vm2, %v5206_v61, -inf }
 0x2f4   :  { %1090 = vmax.xlane.f32.xlu0 %v1089_v60  ;;  %v5282_v60 = vpop.permute.xlu1 %2280 }
 0x2f5   :  { %1045 = vmax.xlane.f32.xlu1 %v1044_v63  ;;  %v5284_v63 = vpop.permute.xlu0 %2111 }
 0x2f6   :  { %v5212_v0 = vpop.f32.mrb[16].mxu0  ;;  %v5214_v1 = vpop.f32.mrb[18].mxu1 }
 0x2f7   :  { %v5216_v2 = vpop.f32.mrb[17].mxu0  ;;  %v5220_v4 = vpop.f32.mrb[19].mxu1  ;;  %v1095_v6 = vsel %vm1031_vm2, %v5212_v0, -inf  ;;  %v1113_v59 = vsel %vm1031_vm2, %v5214_v1, -inf }
 0x2f8   :  { %1048 = vmax.xlane.f32.xlu0 %v1047_v3  ;;  %v1092_v5 = vsel %vm1031_vm2, %v5216_v2, -inf  ;;  %v1110_v24 = vsel %vm1031_vm2, %v5220_v4, -inf }
 0x2f9   :  { %1093 = vmax.xlane.f32.xlu1 %v1092_v5 }
 0x2fa   :  { %v5226_v7 = vpop.f32.mrb[20].mxu1 }
 0x2fb   :  { %v5228_v8 = vpop.f32.mrb[21].mxu1  ;;  %v1119_v3 = vsel %vm1031_vm2, %v5226_v7, -inf }
 0x2fc   :  { %1096 = vmax.xlane.f32.xlu0 %v1095_v6  ;;  %v1116_v30 = vsel %vm1031_vm2, %v5228_v8, -inf }
 0x2fd   :  { %1051 = vmax.xlane.f32.xlu1 %v1050_v9 }
 0x2fe   :  { %v5232_v10 = vpop.f32.mrb[18].mxu0  ;;  %v5234_v11 = vpop.f32.mrb[22].mxu1 }
 0x2ff   :  { %v5238_v13 = vpop.f32.mrb[19].mxu0  ;;  %v5240_v14 = vpop.f32.mrb[23].mxu1  ;;  %v1101_v16 = vsel %vm1031_vm2, %v5232_v10, -inf }
 0x300   :  { %1054 = vmax.xlane.f32.xlu0 %v1053_v12  ;;  %v1098_v18 = vsel %vm1031_vm2, %v5238_v13, -inf  ;;  %v1122_v49 = vsel %vm1031_vm2, %v5240_v14, -inf  ;;  %v1125_v12 = vsel %vm1031_vm2, %v5234_v11, -inf }
 0x304   :  { %1060 = vmax.xlane.f32.xlu0 %v1059_v15 }
 0x308   :  { %1102 = vmax.xlane.f32.xlu0 %v1101_v16 }
 0x30c   :  { %1057 = vmax.xlane.f32.xlu0 %v1056_v17 }
 0x30e   :  { %1978 = vrot.lane.b32.xlu1 %v5069_v35, %s4882_s16  ;;  %v1104_v35 = vsel %vm1031_vm2, %v5208_v62, -inf }
 0x322   :  { %1809 = vrot.lane.b32.xlu0 %v5067_v34, %s4882_s16  ;;  %v1065_v34 = vsel %vm1031_vm2, %v5176_v44, -inf }
 0x332   :  { %1099 = vmax.xlane.f32.xlu1 %v1098_v18 }
 0x336   :  { %1063 = vmax.xlane.f32.xlu1 %v1062_v19 }
 0x33a   :  { %1069 = vmax.xlane.f32.xlu1 %v1068_v20 }
 0x33e   :  { %1075 = vmax.xlane.f32.xlu1 %v1074_v21 }
 0x341   :  { %1066 = vmax.xlane.f32.xlu0 %v1065_v34 }
 0x342   :  { %1105 = vmax.xlane.f32.xlu1 %v1104_v35 }
 0x345   :  { %1072 = vmax.xlane.f32.xlu0 %v1071_v26 }
 0x346   :  { %1111 = vmax.xlane.f32.xlu1 %v1110_v24 }
 0x349   :  { %1078 = vmax.xlane.f32.xlu0 %v1077_v31 }
 0x34a   :  { %1117 = vmax.xlane.f32.xlu1 %v1116_v30 }
 0x34d   :  { %1108 = vmax.xlane.f32.xlu0 %v1107_v57 }
 0x34e   :  { %1123 = vmax.xlane.f32.xlu1 %v1122_v49 }
 0x351   :  { %1114 = vmax.xlane.f32.xlu0 %v1113_v59 }
 0x355   :  { %v1037_v5 = vpop.xlane.xlu1 %1036  ;;  %1120 = vmax.xlane.f32.xlu0 %v1119_v3 }
 0x356   :  { %v1129_v6 = vsub.f32 %v5150_v28, %v1037_v5  ;;  %v1034_v9 = vpop.xlane.xlu0 %1033 }
 0x357   :  { %v1128_v15 = vsub.f32 %v5152_v29, %v1034_v9 }
 0x358   :  { %v1162_v16 = vmul.f32 1.442695, %v1129_v6 }
 0x359   :  { %v1160_v17 = vmul.f32 1.442695, %v1128_v15  ;;  %1126 = vmax.xlane.f32.xlu0 %v1125_v12  ;;  %v6214_v12 = vmov 0.0|0.0  }
 0x35a   :  { %4587 = vpow2.f32 %v1162_v16  ;;  %4409 = vmatprep.subr.bf16.mxu0 %v6214_v12  ;;  %4425 = vmatprep.subr.bf16.mxu1 %v6214_v12 }
 0x35b   :  { %4589 = vpow2.f32 %v1160_v17 }
 0x364   :  { %v5292_v18 = vpop.eup %4587 }
 0x365   :  { %v5294_v19 = vpop.eup %4589  ;;  %v1227_v20 = vsel %vm1031_vm2, %v5292_v18, 0.0 }
 0x366   :  { %1228 = vadd.xlane.f32.xlu0 %v1227_v20  ;;  %v1224_v28 = vsel %vm1031_vm2, %v5294_v19, 0.0 }
 0x367   :  { %1225 = vadd.xlane.f32.xlu1 %v1224_v28 }
 0x375   :  { %v1085_v21 = vpop.xlane.xlu0 %1084 }
 0x376   :  { %v1145_v29 = vsub.f32 %v5174_v43, %v1085_v21  ;;  %v1082_v35 = vpop.xlane.xlu1 %1081 }
 0x377   :  { %v1144_v34 = vsub.f32 %v5178_v45, %v1082_v35 }
 0x378   :  { %v1194_v24 = vmul.f32 1.442695, %v1145_v29 }
 0x379   :  { %v1192_v26 = vmul.f32 1.442695, %v1144_v34  ;;  %v1043_v30 = vpop.xlane.xlu0 %1042 }
 0x37a   :  { %4591 = vpow2.f32 %v1194_v24  ;;  %v1131_v31 = vsub.f32 %v5158_v32, %v1043_v30 }
 0x37b   :  { %4593 = vpow2.f32 %v1192_v26 }
 0x37c   :  { %v1166_v49 = vmul.f32 1.442695, %v1131_v31 }
 0x37d   :  { %v1040_v57 = vpop.xlane.xlu0 %1039 }
 0x37e   :  { %4595 = vpow2.f32 %v1166_v49  ;;  %v1130_v59 = vsub.f32 %v5160_v33, %v1040_v57  ;;  %v1088_v3 = vpop.xlane.xlu1 %1087 }
 0x37f   :  { %v1146_v5 = vsub.f32 %v5196_v55, %v1088_v3 }
 0x380   :  { %v1164_v6 = vmul.f32 1.442695, %v1130_v59 }
 0x381   :  { %v1196_v43 = vmul.f32 1.442695, %v1146_v5  ;;  %v1091_v9 = vpop.xlane.xlu0 %1090 }
 0x382   :  { %4597 = vpow2.f32 %v1164_v6  ;;  %v1147_v32 = vsub.f32 %v5192_v53, %v1091_v9  ;;  %v1046_v45 = vpop.xlane.xlu1 %1045 }
 0x383   :  { %v1132_v15 = vsub.f32 %v5164_v37, %v1046_v45  ;;  %4599 = vpow2.f32 %v1196_v43 }
 0x384   :  { %v5309_v16 = vpop.eup %4591  ;;  %v1198_v33 = vmul.f32 1.442695, %v1147_v32 }
 0x385   :  { %v5311_v17 = vpop.eup %4593  ;;  %v1168_v55 = vmul.f32 1.442695, %v1132_v15  ;;  %v1049_v20 = vpop.xlane.xlu0 %1048  ;;  %v1275_v28 = vsel %vm1031_vm2, %v5309_v16, 0.0 }
 0x386   :  { %4601 = vpow2.f32 %v1198_v33  ;;  %v1133_v21 = vsub.f32 %v5162_v36, %v1049_v20  ;;  %v1094_v29 = vpop.xlane.xlu1 %1093  ;;  %1276 = vadd.xlane.f32.xlu0 %v1275_v28  ;;  %v1272_v53 = vsel %vm1031_vm2, %v5311_v17, 0.0 }
 0x387   :  { %v1148_v37 = vsub.f32 %v5216_v2, %v1094_v29  ;;  %1273 = vadd.xlane.f32.xlu1 %v1272_v53  ;;  %4603 = vpow2.f32 %v1168_v55 }
 0x388   :  { %v5319_v35 = vpop.eup %4595  ;;  %v1170_v34 = vmul.f32 1.442695, %v1133_v21 }
 0x389   :  { %v1200_v24 = vmul.f32 1.442695, %v1148_v37  ;;  %v1097_v26 = vpop.xlane.xlu0 %1096  ;;  %v1233_v30 = vsel %vm1031_vm2, %v5319_v35, 0.0 }
 0x38a   :  { %4605 = vpow2.f32 %v1170_v34  ;;  %v1149_v36 = vsub.f32 %v5212_v0, %v1097_v26  ;;  %v1052_v31 = vpop.xlane.xlu1 %1051  ;;  %1234 = vadd.xlane.f32.xlu0 %v1233_v30 }
 0x38b   :  { %v1134_v49 = vsub.f32 %v5168_v40, %v1052_v31  ;;  %4607 = vpow2.f32 %v1200_v24 }
 0x38c   :  { %v5325_v57 = vpop.eup %4597  ;;  %v1202_v2 = vmul.f32 1.442695, %v1149_v36 }
 0x38d   :  { %v1172_v59 = vmul.f32 1.442695, %v1134_v49  ;;  %v1055_v3 = vpop.xlane.xlu0 %1054  ;;  %v1230_v5 = vsel %vm1031_vm2, %v5325_v57, 0.0  ;;  %v5329_v6 = vpop.eup %4599 }
 0x38e   :  { %4609 = vpow2.f32 %v1202_v2  ;;  %v1135_v43 = vsub.f32 %v5166_v38, %v1055_v3  ;;  %1231 = vadd.xlane.f32.xlu1 %v1230_v5  ;;  %v1278_v32 = vsel %vm1031_vm2, %v5329_v6, 0.0 }
 0x38f   :  { %4611 = vpow2.f32 %v1172_v59 }
 0x390   :  { %v5332_v0 = vpop.eup %4601  ;;  %v1174_v9 = vmul.f32 1.442695, %v1135_v43 }
 0x391   :  { %v1061_v40 = vpop.xlane.xlu0 %1060  ;;  %v1281_v45 = vsel %vm1031_vm2, %v5332_v0, 0.0  ;;  %v5338_v15 = vpop.eup %4603 }
 0x392   :  { %4613 = vpow2.f32 %v1174_v9  ;;  %v1137_v33 = vsub.f32 %v5170_v41, %v1061_v40  ;;  %1279 = vadd.xlane.f32.xlu1 %v1278_v32  ;;  %1282 = vadd.xlane.f32.xlu0 %v1281_v45  ;;  %v1236_v28 = vsel %vm1031_vm2, %v5338_v15, 0.0  ;;  %v5377_v40 = vpop.permute.xlu1 %1978 }
 0x394   :  { %v5341_v38 = vpop.eup %4605  ;;  %v1178_v55 = vmul.f32 1.442695, %v1137_v33 }
 0x395   :  { %v1103_v20 = vpop.xlane.xlu0 %1102  ;;  %v1239_v21 = vsel %vm1031_vm2, %v5341_v38, 0.0  ;;  %v5347_v29 = vpop.eup %4607 }
 0x396   :  { %4615 = vpow2.f32 %v1178_v55  ;;  %v1151_v53 = vsub.f32 %v5232_v10, %v1103_v20  ;;  %1237 = vadd.xlane.f32.xlu1 %v1236_v28  ;;  %1240 = vadd.xlane.f32.xlu0 %v1239_v21  ;;  %v1284_v24 = vsel %vm1031_vm2, %v5347_v29, 0.0  ;;  %v6212_v55 = vmov 0.0  }
 0x397   :  { %4167 = vmatprep.mubr.msk.f32.mxu0 %vm4884_vm3, %v6212_v55  ;;  %4186 = vmatprep.mubr.msk.f32.mxu1 %vm4884_vm3, %v6212_v55 }
 0x398   :  { %v5350_v41 = vpop.eup %4609  ;;  %v1206_v37 = vmul.f32 1.442695, %v1151_v53 }
 0x399   :  { %v1058_v34 = vpop.xlane.xlu0 %1057  ;;  %v1287_v26 = vsel %vm1031_vm2, %v5350_v41, 0.0  ;;  %v5356_v30 = vpop.eup %4611 }
 0x39a   :  { %4617 = vpow2.f32 %v1206_v37  ;;  %v1136_v36 = vsub.f32 %v5172_v42, %v1058_v34  ;;  %1285 = vadd.xlane.f32.xlu1 %v1284_v24  ;;  %1288 = vadd.xlane.f32.xlu0 %v1287_v26  ;;  %v1242_v49 = vsel %vm1031_vm2, %v5356_v30, 0.0 }
 0x39c   :  { %v5359_v10 = vpop.eup %4613  ;;  %v1176_v31 = vmul.f32 1.442695, %v1136_v36 }
 0x39d   :  { %v1245_v2 = vsel %vm1031_vm2, %v5359_v10, 0.0  ;;  %v5386_v34 = vpop.permute.xlu0 %1809 }
 0x39e   :  { %4619 = vpow2.f32 %v1176_v31  ;;  %1243 = vadd.xlane.f32.xlu1 %v1242_v49  ;;  %1246 = vadd.xlane.f32.xlu0 %v1245_v2 }
 0x3a0   :  { %v5365_v59 = vpop.eup %4615 }
 0x3a1   :  { %v1251_v3 = vsel %vm1031_vm2, %v5365_v59, 0.0 }
 0x3a2   :  { %1252 = vadd.xlane.f32.xlu0 %v1251_v3 }
 0x3a4   :  { %v5369_v42 = vpop.eup %4617 }
 0x3a5   :  { %v1293_v5 = vsel %vm1031_vm2, %v5369_v42, 0.0 }
 0x3a6   :  { %1294 = vadd.xlane.f32.xlu0 %v1293_v5 }
 0x3a8   :  { %v5373_v43 = vpop.eup %4619 }
 0x3a9   :  { %v1248_v9 = vsel %vm1031_vm2, %v5373_v43, 0.0 }
 0x3aa   :  { %1249 = vadd.xlane.f32.xlu1 %v1248_v9 }
 0x3bf   :  { %v1100_v32 = vpop.xlane.xlu1 %1099 }
 0x3c0   :  { %v1150_v45 = vsub.f32 %v5238_v13, %v1100_v32 }
 0x3c2   :  { %v1204_v33 = vmul.f32 1.442695, %v1150_v45 }
 0x3c3   :  { %v1064_v20 = vpop.xlane.xlu1 %1063 }
 0x3c4   :  { %4621 = vpow2.f32 %v1204_v33  ;;  %v1138_v28 = vsub.f32 %v5182_v48, %v1064_v20 }
 0x3c6   :  { %v1180_v21 = vmul.f32 1.442695, %v1138_v28 }
 0x3c7   :  { %v1070_v53 = vpop.xlane.xlu1 %1069 }
 0x3c8   :  { %4623 = vpow2.f32 %v1180_v21  ;;  %v1140_v37 = vsub.f32 %v5190_v52, %v1070_v53 }
 0x3ca   :  { %v1184_v13 = vmul.f32 1.442695, %v1140_v37 }
 0x3cb   :  { %v1076_v24 = vpop.xlane.xlu1 %1075 }
 0x3cc   :  { %4625 = vpow2.f32 %v1184_v13  ;;  %v1142_v26 = vsub.f32 %v5200_v58, %v1076_v24 }
 0x3ce   :  { %v5389_v36 = vpop.eup %4621  ;;  %v1188_v31 = vmul.f32 1.442695, %v1142_v26  ;;  %v1067_v49 = vpop.xlane.xlu0 %1066 }
 0x3cf   :  { %v1139_v2 = vsub.f32 %v5176_v44, %v1067_v49  ;;  %v1106_v3 = vpop.xlane.xlu1 %1105  ;;  %v1290_v48 = vsel %vm1031_vm2, %v5389_v36, 0.0 }
 0x3d0   :  { %4627 = vpow2.f32 %v1188_v31  ;;  %v1152_v52 = vsub.f32 %v5208_v62, %v1106_v3  ;;  %1291 = vadd.xlane.f32.xlu1 %v1290_v48 }
 0x3d1   :  { %v1182_v5 = vmul.f32 1.442695, %v1139_v2 }
 0x3d2   :  { %v5395_v9 = vpop.eup %4623  ;;  %v1208_v32 = vmul.f32 1.442695, %v1152_v52  ;;  %v1073_v45 = vpop.xlane.xlu0 %1072 }
 0x3d3   :  { %4629 = vpow2.f32 %v1182_v5  ;;  %v1141_v58 = vsub.f32 %v5186_v50, %v1073_v45  ;;  %v1112_v33 = vpop.xlane.xlu1 %1111  ;;  %v1254_v44 = vsel %vm1031_vm2, %v5395_v9, 0.0 }
 0x3d4   :  { %4631 = vpow2.f32 %v1208_v32  ;;  %v1154_v20 = vsub.f32 %v5220_v4, %v1112_v33  ;;  %1255 = vadd.xlane.f32.xlu1 %v1254_v44 }
 0x3d5   :  { %v1186_v28 = vmul.f32 1.442695, %v1141_v58 }
 0x3d6   :  { %v5401_v21 = vpop.eup %4625  ;;  %v1212_v62 = vmul.f32 1.442695, %v1154_v20  ;;  %v1079_v53 = vpop.xlane.xlu0 %1078 }
 0x3d7   :  { %4633 = vpow2.f32 %v1186_v28  ;;  %v1143_v37 = vsub.f32 %v5194_v54, %v1079_v53  ;;  %v1118_v13 = vpop.xlane.xlu1 %1117  ;;  %v1260_v50 = vsel %vm1031_vm2, %v5401_v21, 0.0 }
 0x3d8   :  { %4635 = vpow2.f32 %v1212_v62  ;;  %v1156_v24 = vsub.f32 %v5228_v8, %v1118_v13  ;;  %1261 = vadd.xlane.f32.xlu1 %v1260_v50 }
 0x3d9   :  { %v1190_v26 = vmul.f32 1.442695, %v1143_v37 }
 0x3da   :  { %v5407_v31 = vpop.eup %4627  ;;  %v1216_v4 = vmul.f32 1.442695, %v1156_v24  ;;  %v1109_v49 = vpop.xlane.xlu0 %1108 }
 0x3db   :  { %4637 = vpow2.f32 %v1190_v26  ;;  %v1153_v2 = vsub.f32 %v5206_v61, %v1109_v49  ;;  %v1124_v3 = vpop.xlane.xlu1 %1123  ;;  %v1266_v54 = vsel %vm1031_vm2, %v5407_v31, 0.0 }
 0x3dc   :  { %4639 = vpow2.f32 %v1216_v4  ;;  %v1158_v48 = vsub.f32 %v5240_v14, %v1124_v3  ;;  %1267 = vadd.xlane.f32.xlu1 %v1266_v54 }
 0x3dd   :  { %v5413_v52 = vpop.eup %4629  ;;  %v1210_v8 = vmul.f32 1.442695, %v1153_v2 }
 0x3de   :  { %v5415_v5 = vpop.eup %4631  ;;  %v1220_v32 = vmul.f32 1.442695, %v1158_v48  ;;  %v1115_v45 = vpop.xlane.xlu0 %1114  ;;  %v1257_v58 = vsel %vm1031_vm2, %v5413_v52, 0.0 }
 0x3df   :  { %4641 = vpow2.f32 %v1210_v8  ;;  %v1155_v61 = vsub.f32 %v5214_v1, %v1115_v45  ;;  %1258 = vadd.xlane.f32.xlu0 %v1257_v58  ;;  %v1296_v33 = vsel %vm1031_vm2, %v5415_v5, 0.0 }
 0x3e0   :  { %4643 = vpow2.f32 %v1220_v32  ;;  %1297 = vadd.xlane.f32.xlu1 %v1296_v33 }
 0x3e1   :  { %v5422_v14 = vpop.eup %4633  ;;  %v1214_v44 = vmul.f32 1.442695, %v1155_v61 }
 0x3e2   :  { %v5424_v20 = vpop.eup %4635  ;;  %v1121_v28 = vpop.xlane.xlu0 %1120  ;;  %v1263_v62 = vsel %vm1031_vm2, %v5422_v14, 0.0 }
 0x3e3   :  { %4645 = vpow2.f32 %v1214_v44  ;;  %v1157_v53 = vsub.f32 %v5226_v7, %v1121_v28  ;;  %1264 = vadd.xlane.f32.xlu0 %v1263_v62  ;;  %v1302_v1 = vsel %vm1031_vm2, %v5424_v20, 0.0 }
 0x3e4   :  { %1303 = vadd.xlane.f32.xlu1 %v1302_v1 }
 0x3e5   :  { %v5431_v37 = vpop.eup %4637  ;;  %v1218_v13 = vmul.f32 1.442695, %v1157_v53 }
 0x3e6   :  { %v5433_v50 = vpop.eup %4639  ;;  %v1127_v24 = vpop.xlane.xlu0 %1126  ;;  %v1269_v26 = vsel %vm1031_vm2, %v5431_v37, 0.0 }
 0x3e7   :  { %4647 = vpow2.f32 %v1218_v13  ;;  %v1159_v4 = vsub.f32 %v5234_v11, %v1127_v24  ;;  %1270 = vadd.xlane.f32.xlu0 %v1269_v26  ;;  %v1308_v7 = vsel %vm1031_vm2, %v5433_v50, 0.0  ;;  %v3218_v13 = vld [vmem:[%s6204_s6 + $0x10] sm:$0xff] }
 0x3e8   :  { %1309 = vadd.xlane.f32.xlu1 %v1308_v7 }
 0x3e9   :  { %v5440_v49 = vpop.eup %4641  ;;  %v1222_v2 = vmul.f32 1.442695, %v1159_v4 }
 0x3ea   :  { %v5442_v3 = vpop.eup %4643  ;;  %v1299_v54 = vsel %vm1031_vm2, %v5440_v49, 0.0 }
 0x3eb   :  { %4649 = vpow2.f32 %v1222_v2  ;;  %1300 = vadd.xlane.f32.xlu0 %v1299_v54  ;;  %v1314_v48 = vsel %vm1031_vm2, %v5442_v3, 0.0 }
 0x3ec   :  { %1315 = vadd.xlane.f32.xlu1 %v1314_v48 }
 0x3ed   :  { %v5448_v11 = vpop.eup %4645 }
 0x3ee   :  { %v1305_v8 = vsel %vm1031_vm2, %v5448_v11, 0.0 }
 0x3ef   :  { %1306 = vadd.xlane.f32.xlu0 %v1305_v8 }
 0x3f1   :  { %v5452_v32 = vpop.eup %4647 }
 0x3f2   :  { %v1311_v45 = vsel %vm1031_vm2, %v5452_v32, 0.0 }
 0x3f3   :  { %1312 = vadd.xlane.f32.xlu0 %v1311_v45  ;;  %v1229_v58 = vpop.xlane.xlu0 %1228 }
 0x3f4   :  { %4651 = vrcp.f32 %v1229_v58  ;;  %v1226_v61 = vpop.xlane.xlu1 %1225 }
 0x3f5   :  { %v5456_v33 = vpop.eup %4649  ;;  %4653 = vrcp.f32 %v1226_v61 }
 0x3f6   :  { %v1317_v44 = vsel %vm1031_vm2, %v5456_v33, 0.0 }
 0x3f7   :  { %1318 = vadd.xlane.f32.xlu0 %v1317_v44 }
 0x3fe   :  { %v4652_v28 = vpop.eup %4651 }
 0x3ff   :  { %v4654_v62 = vpop.eup %4653  ;;  %v1353_v53 = vmul.f32 %v4652_v28, %v5292_v18 }
 0x400   :  { %v1352_v1 = vmul.f32 %v4654_v62, %v5294_v19 }
 0x402   :  { %v4410_v24 = vpack.c.bf16 %v1353_v53, %v1352_v1 }
 0x404   :  { %4412 = vmatpush3.bf16.xpose.msk.msra.mxu0 %vm5464_vm4, %v4410_v24 }
 0x405   :  { %4413 = vmatprep.subr.bf16.mxu0 %v6214_v12 }
 0x413   :  { %v1277_v26 = vpop.xlane.xlu0 %1276 }
 0x414   :  { %v1274_v4 = vpop.xlane.xlu1 %1273 }
 0x417   :  { %v1235_v7 = vpop.xlane.xlu0 %1234 }
 0x418   :  { %4655 = vrcp.f32 %v1235_v7 }
 0x41b   :  { %v1232_v2 = vpop.xlane.xlu1 %1231 }
 0x41c   :  { %4657 = vrcp.f32 %v1232_v2 }
 0x41f   :  { %v1280_v18 = vpop.xlane.xlu1 %1279  ;;  %1945 = vxpose.xlu1.b32.start.end [1/1] (short) (narrow) %v5276_v51, 64  ;;  %v1283_v19 = vpop.xlane.xlu0 %1282 }
 0x422   :  { %v4656_v8 = vpop.eup %4655 }
 0x423   :  { %v1238_v54 = vpop.xlane.xlu1 %1237  ;;  %v1241_v48 = vpop.xlane.xlu0 %1240  ;;  %v1355_v58 = vmul.f32 %v4656_v8, %v5319_v35 }
 0x424   :  { %4659 = vrcp.f32 %v1238_v54  ;;  %1776 = vxpose.xlu0.b32.start.end [1/1] (short) (narrow) %v5142_v23, 64 }
 0x425   :  { %4661 = vrcp.f32 %v1241_v48 }
 0x426   :  { %v4658_v45 = vpop.eup %4657 }
 0x427   :  { %v1354_v61 = vmul.f32 %v4658_v45, %v5325_v57  ;;  %v1286_v44 = vpop.xlane.xlu1 %1285  ;;  %v1289_v28 = vpop.xlane.xlu0 %1288 }
 0x429   :  { %v4414_v62 = vpack.c.bf16 %v1355_v58, %v1354_v61 }
 0x42b   :  { %v1244_v53 = vpop.xlane.xlu1 %1243  ;;  %4416 = vmatpush3.bf16.xpose.msk.msra.mxu0 %vm5464_vm4, %v4414_v62  ;;  %v1247_v51 = vpop.xlane.xlu0 %1246 }
 0x42c   :  { %4663 = vrcp.f32 %v1244_v53  ;;  %4417 = vmatprep.subr.bf16.mxu0 %v6214_v12 }
 0x42d   :  { %4665 = vrcp.f32 %v1247_v51 }
 0x42e   :  { %v4660_v1 = vpop.eup %4659  ;;  %4667 = vrcp.f32 %v1277_v26 }
 0x42f   :  { %v4662_v23 = vpop.eup %4661  ;;  %v1356_v24 = vmul.f32 %v4660_v1, %v5338_v15  ;;  %4669 = vrcp.f32 %v1274_v4  ;;  %v1253_v7 = vpop.xlane.xlu0 %1252 }
 0x430   :  { %v1357_v35 = vmul.f32 %v4662_v23, %v5341_v38  ;;  %4671 = vrcp.f32 %v1253_v7 }
 0x431   :  { %4673 = vrcp.f32 %v1280_v18 }
 0x432   :  { %v4418_v57 = vpack.c.bf16 %v1357_v35, %v1356_v24 }
 0x434   :  { %4420 = vmatpush3.bf16.xpose.msk.msra.mxu0 %vm5464_vm4, %v4418_v57 }
 0x435   :  { %4421 = vmatprep.subr.bf16.mxu0 %v6214_v12 }
 0x436   :  { %v4664_v2 = vpop.eup %4663 }
 0x437   :  { %v4666_v54 = vpop.eup %4665  ;;  %v1358_v48 = vmul.f32 %v4664_v2, %v5356_v30  ;;  %v1250_v8 = vpop.xlane.xlu1 %1249 }
 0x438   :  { %v1359_v15 = vmul.f32 %v4666_v54, %v5359_v10  ;;  %4675 = vrcp.f32 %v1250_v8  ;;  %v4668_v38 = vpop.eup %4667 }
 0x439   :  { %4677 = vrcp.f32 %v1283_v19  ;;  %v4670_v4 = vpop.eup %4669  ;;  %v1369_v45 = vmul.f32 %v4668_v38, %v5309_v16 }
 0x43a   :  { %v4422_v26 = vpack.c.bf16 %v1359_v15, %v1358_v48  ;;  %v1368_v58 = vmul.f32 %v4670_v4, %v5311_v17  ;;  %v4672_v18 = vpop.eup %4671  ;;  %4679 = vrcp.f32 %v1286_v44 }
 0x43b   :  { %v4674_v30 = vpop.eup %4673  ;;  %4681 = vrcp.f32 %v1289_v28  ;;  %v1361_v19 = vmul.f32 %v4672_v18, %v5365_v59 }
 0x43c   :  { %4424 = vmatpush3.bf16.xpose.msk.msra.mxu0 %vm5464_vm4, %v4422_v26  ;;  %v4442_v10 = vpack.c.bf16 %v1369_v45, %v1368_v58  ;;  %v1370_v17 = vmul.f32 %v4674_v30, %v5329_v6 }
 0x43d   :  { %4441 = vmatprep.subr.bf16.mxu0 %v6214_v12 }
 0x442   :  { %v4676_v61 = vpop.eup %4675 }
 0x443   :  { %v4678_v62 = vpop.eup %4677  ;;  %v1360_v53 = vmul.f32 %v4676_v61, %v5373_v43  ;;  %4168 = vmatmul.mubr.msk.f32.vlgmr.msra.gmra.mrb[20].mxu0 %vm1031_vm2, %v5140_v22 }
 0x444   :  { %4444 = vmatpush3.bf16.xpose.msk.msra.mxu0 %vm5464_vm4, %v4442_v10  ;;  %4205 = vmatprep.mubr.msk.f32.mxu0 %vm4884_vm3, %v6212_v55  ;;  %v1371_v44 = vmul.f32 %v4678_v62, %v5332_v0  ;;  %v4680_v59 = vpop.eup %4679  ;;  %v1295_v0 = vpop.xlane.xlu0 %1294 }
 0x445   :  { %v4426_v16 = vpack.c.bf16 %v1361_v19, %v1360_v53  ;;  %4445 = vmatprep.subr.bf16.mxu0 %v6214_v12  ;;  %v4682_v28 = vpop.eup %4681  ;;  %v1372_v51 = vmul.f32 %v4680_v59, %v5347_v29  ;;  %4683 = vrcp.f32 %v1295_v0 }
 0x446   :  { %v4446_v43 = vpack.c.bf16 %v1371_v44, %v1370_v17  ;;  %v1373_v1 = vmul.f32 %v4682_v28, %v5350_v41 }
 0x447   :  { %4428 = vmatpush3.bf16.xpose.msk.msra.mxu1 %vm5464_vm4, %v4426_v16 }
 0x448   :  { %4429 = vmatprep.subr.bf16.mxu1 %v6214_v12  ;;  %v4450_v6 = vpack.c.bf16 %v1373_v1, %v1372_v51 }
 0x44c   :  { %4448 = vmatpush3.bf16.xpose.msk.msra.mxu0 %vm5464_vm4, %v4446_v43 }
 0x44d   :  { %4449 = vmatprep.subr.bf16.mxu0 %v6214_v12 }
 0x44f   :  { %v4684_v24 = vpop.eup %4683 }
 0x450   :  { %v1375_v29 = vmul.f32 %v4684_v24, %v5369_v42 }
 0x454   :  { %4452 = vmatpush3.bf16.xpose.msk.msra.mxu0 %vm5464_vm4, %v4450_v6 }
 0x455   :  { %4453 = vmatprep.subr.bf16.mxu0 %v6214_v12 }
 0x459   :  { %2316 = vrot.lane.b32.xlu1 %v5103_v56, %s4882_s16 }
 0x45d   :  { %v1292_v23 = vpop.xlane.xlu1 %1291 }
 0x45e   :  { %4685 = vrcp.f32 %v1292_v23 }
 0x461   :  { %v1256_v57 = vpop.xlane.xlu1 %1255 }
 0x462   :  { %4687 = vrcp.f32 %v1256_v57 }
 0x465   :  { %v1262_v56 = vpop.xlane.xlu1 %1261 }
 0x468   :  { %v4686_v35 = vpop.eup %4685 }
 0x469   :  { %v1374_v41 = vmul.f32 %v4686_v35, %v5389_v36  ;;  %2147 = vrot.lane.b32.xlu0 %v5073_v39, %s4882_s16  ;;  %v1268_v8 = vpop.xlane.xlu1 %1267 }
 0x46b   :  { %v4454_v7 = vpack.c.bf16 %v1375_v29, %v1374_v41 }
 0x46c   :  { %v1259_v2 = vpop.xlane.xlu0 %1258  ;;  %v4688_v42 = vpop.eup %4687 }
 0x46d   :  { %4689 = vrcp.f32 %v1259_v2  ;;  %4456 = vmatpush3.bf16.xpose.msk.msra.mxu0 %vm5464_vm4, %v4454_v7  ;;  %v1362_v48 = vmul.f32 %v4688_v42, %v5395_v9  ;;  %v1298_v18 = vpop.xlane.xlu1 %1297 }
 0x46e   :  { %4227 = vmatprep.subr.mxu0 %v5386_v34 }
 0x470   :  { %v1265_v54 = vpop.xlane.xlu0 %1264 }
 0x471   :  { %4691 = vrcp.f32 %v1265_v54 }
 0x472   :  { %4693 = vrcp.f32 %v1262_v56 }
 0x474   :  { %4206 = vmatmul.mubr.msk.f32.vlgmr.msra.gmra.mrb[22].mxu0 %vm1031_vm2, %v5145_v25  ;;  %v1271_v39 = vpop.xlane.xlu0 %1270 }
 0x475   :  { %4228 = vmatpush3.msra.mxu0 %v5386_v34  ;;  %4695 = vrcp.f32 %v1271_v39 }
 0x476   :  { %4697 = vrcp.f32 %v1268_v8 }
 0x477   :  { %v4690_v36 = vpop.eup %4689 }
 0x478   :  { %v1363_v15 = vmul.f32 %v4690_v36, %v5413_v52  ;;  %v1301_v34 = vpop.xlane.xlu0 %1300 }
 0x479   :  { %4699 = vrcp.f32 %v1301_v34 }
 0x47a   :  { %v4430_v38 = vpack.c.bf16 %v1363_v15, %v1362_v48  ;;  %4701 = vrcp.f32 %v1298_v18 }
 0x47b   :  { %v4692_v26 = vpop.eup %4691 }
 0x47c   :  { %4432 = vmatpush3.bf16.xpose.msk.msra.mxu1 %vm5464_vm4, %v4430_v38  ;;  %v4694_v4 = vpop.eup %4693  ;;  %v1365_v45 = vmul.f32 %v4692_v26, %v5422_v14  ;;  %v1307_v10 = vpop.xlane.xlu0 %1306 }
 0x47d   :  { %4433 = vmatprep.subr.bf16.mxu1 %v6214_v12  ;;  %v1364_v58 = vmul.f32 %v4694_v4, %v5401_v21  ;;  %v1304_v14 = vpop.xlane.xlu1 %1303  ;;  %4703 = vrcp.f32 %v1307_v10 }
 0x47e   :  { %4705 = vrcp.f32 %v1304_v14 }
 0x47f   :  { %v4434_v9 = vpack.c.bf16 %v1365_v45, %v1364_v58  ;;  %v4696_v52 = vpop.eup %4695 }
 0x480   :  { %v4698_v30 = vpop.eup %4697  ;;  %v1367_v61 = vmul.f32 %v4696_v52, %v5431_v37  ;;  %v1313_v16 = vpop.xlane.xlu0 %1312 }
 0x481   :  { %v1366_v21 = vmul.f32 %v4698_v30, %v5407_v31  ;;  %v1310_v17 = vpop.xlane.xlu1 %1309  ;;  %4707 = vrcp.f32 %v1313_v16 }
 0x482   :  { %2283 = vxpose.xlu1.b32.start.end [1/1] (short) (narrow) %v5282_v60, 64  ;;  %4709 = vrcp.f32 %v1310_v17 }
 0x483   :  { %v4438_v62 = vpack.c.bf16 %v1367_v61, %v1366_v21  ;;  %v4700_v60 = vpop.eup %4699 }
 0x484   :  { %4436 = vmatpush3.bf16.xpose.msk.msra.mxu1 %vm5464_vm4, %v4434_v9  ;;  %v4702_v19 = vpop.eup %4701  ;;  %v1377_v53 = vmul.f32 %v4700_v60, %v5440_v49 }
 0x485   :  { %4437 = vmatprep.subr.bf16.mxu1 %v6214_v12  ;;  %v1376_v37 = vmul.f32 %v4702_v19, %v5415_v5  ;;  %v1319_v5 = vpop.xlane.xlu0 %1318  ;;  %v1316_v43 = vpop.xlane.xlu1 %1315 }
 0x486   :  { %4711 = vrcp.f32 %v1319_v5 }
 0x487   :  { %2114 = vxpose.xlu0.b32.start.end [1/1] (short) (narrow) %v5284_v63, 64  ;;  %v4458_v63 = vpack.c.bf16 %v1377_v53, %v1376_v37  ;;  %v4704_v31 = vpop.eup %4703  ;;  %4713 = vrcp.f32 %v1316_v43 }
 0x488   :  { %v4706_v44 = vpop.eup %4705  ;;  %v1379_v49 = vmul.f32 %v4704_v31, %v5448_v11 }
 0x489   :  { %v1378_v59 = vmul.f32 %v4706_v44, %v5424_v20 }
 0x48b   :  { %v4462_v28 = vpack.c.bf16 %v1379_v49, %v1378_v59  ;;  %v4708_v51 = vpop.eup %4707 }
 0x48c   :  { %4440 = vmatpush3.bf16.xpose.msk.msra.mxu1 %vm5464_vm4, %v4438_v62  ;;  %v4710_v1 = vpop.eup %4709  ;;  %v1381_v6 = vmul.f32 %v4708_v51, %v5452_v32 }
 0x48d   :  { %4457 = vmatprep.subr.bf16.mxu1 %v6214_v12  ;;  %v1380_v23 = vmul.f32 %v4710_v1, %v5433_v50 }
 0x48f   :  { %v4466_v11 = vpack.c.bf16 %v1381_v6, %v1380_v23 }
 0x490   :  { %v4712_v24 = vpop.eup %4711 }
 0x491   :  { %v4714_v57 = vpop.eup %4713  ;;  %v1383_v29 = vmul.f32 %v4712_v24, %v5456_v33  ;;  %v5570_v33 = vadd.f32 %v5089_v47, %v5272_v46 }
 0x492   :  { %v1382_v32 = vmul.f32 %v4714_v57, %v5442_v3 }
 0x493   :  { %4187 = vmatmul.mubr.msk.f32.vlgmr.msra.gmra.mrb[24].mxu1 %vm1031_vm2, %v5148_v27 }
 0x494   :  { %4460 = vmatpush3.bf16.xpose.msk.msra.mxu1 %vm5464_vm4, %v4458_v63  ;;  %4224 = vmatprep.mubr.msk.f32.mxu1 %vm4884_vm3, %v6212_v55  ;;  %v4470_v50 = vpack.c.bf16 %v1383_v29, %v1382_v32 }
 0x495   :  { %4461 = vmatprep.subr.bf16.mxu1 %v6214_v12 }
 0x49c   :  { %4464 = vmatpush3.bf16.xpose.msk.msra.mxu1 %vm5464_vm4, %v4462_v28 }
 0x49d   :  { %4465 = vmatprep.subr.bf16.mxu1 %v6214_v12 }
 0x49f   :  { %v1961_v0 = vpop.trf.xlu1 }
 0x4a3   :  { %v1962_v35 = vpop.trf.xlu1 }
 0x4a4   :  { %4468 = vmatpush3.bf16.xpose.msk.msra.mxu1 %vm5464_vm4, %v4466_v11  ;;  %v1792_v20 = vpop.trf.xlu0 }
 0x4a5   :  { %4229 = vmatprep.mubr.msk.f32.mxu0 %vm418_vm1, %v1792_v20  ;;  %4469 = vmatprep.subr.bf16.mxu1 %v6214_v12 }
 0x4a7   :  { %v1963_v41 = vpop.trf.xlu1 }
 0x4a8   :  { %v1793_v7 = vpop.trf.xlu0 }
 0x4a9   :  { %4230 = vmatmul.mubr.msk.f32.vlgmr.msra.gmra.mrb[24].mxu0 %vm418_vm1, %v1793_v7 }
 0x4ab   :  { %v1964_v2 = vpop.trf.xlu1 }
 0x4ac   :  { %4472 = vmatpush3.bf16.xpose.msk.msra.mxu1 %vm5464_vm4, %v4470_v50  ;;  %v1794_v56 = vpop.trf.xlu0 }
 0x4ad   :  { %4241 = vmatprep.subr.mxu1 %v5377_v40  ;;  %4232 = vmatprep.mubr.msk.f32.mxu0 %vm418_vm1, %v1794_v56 }
 0x4af   :  { %v1965_v42 = vpop.trf.xlu1 }
 0x4b0   :  { %v1795_v54 = vpop.trf.xlu0 }
 0x4b1   :  { %4233 = vmatmul.mubr.msk.f32.gmra.mrb[26].mxu0 %vm418_vm1, %v1795_v54 }
 0x4b3   :  { %4225 = vmatmul.mubr.msk.f32.vlgmr.msra.gmra.mrb[26].mxu1 %vm1031_vm2, %v5570_v33  ;;  %v1966_v39 = vpop.trf.xlu1 }
 0x4b4   :  { %4242 = vmatpush3.msra.mxu1 %v5377_v40  ;;  %v1796_v3 = vpop.trf.xlu0  ;;  %4243 = vmatprep.mubr.msk.f32.mxu1 %vm418_vm1, %v1961_v0 }
 0x4b5   :  { %4235 = vmatprep.mubr.msk.f32.mxu0 %vm418_vm1, %v1796_v3 }
 0x4b7   :  { %4244 = vmatmul.mubr.msk.f32.vlgmr.msra.gmra.mrb[28].mxu1 %vm418_vm1, %v1962_v35  ;;  %v1967_v46 = vpop.trf.xlu1 }
 0x4b8   :  { %v1797_v36 = vpop.trf.xlu0  ;;  %4246 = vmatprep.mubr.msk.f32.mxu1 %vm418_vm1, %v1963_v41 }
 0x4b9   :  { %4236 = vmatmul.mubr.msk.f32.gmra.mrb[28].mxu0 %vm418_vm1, %v1797_v36 }
 0x4bb   :  { %4247 = vmatmul.mubr.msk.f32.gmra.mrb[30].mxu1 %vm418_vm1, %v1964_v2  ;;  %v1968_v48 = vpop.trf.xlu1 }
 0x4bc   :  { %v1798_v47 = vpop.trf.xlu0  ;;  %4249 = vmatprep.mubr.msk.f32.mxu1 %vm418_vm1, %v1965_v42 }
 0x4bd   :  { %4238 = vmatprep.mubr.msk.f32.mxu0 %vm418_vm1, %v1798_v47 }
 0x4bf   :  { %4250 = vmatmul.mubr.msk.f32.gmra.mrb[32].mxu1 %vm418_vm1, %v1966_v39 }
 0x4c0   :  { %v1799_v40 = vpop.trf.xlu0  ;;  %4252 = vmatprep.mubr.msk.f32.mxu1 %vm418_vm1, %v1967_v46 }
 0x4c1   :  { %4239 = vmatmul.mubr.msk.f32.gmra.mrb[30].mxu0 %vm418_vm1, %v1799_v40 }
 0x4c3   :  { %4253 = vmatmul.mubr.msk.f32.gmra.mrb[34].mxu1 %vm418_vm1, %v1968_v48 }
 0x4cb   :  { %v2317_v8 = vpop.permute.xlu1 %2316 }
 0x4cc   :  { %4269 = vmatprep.subr.mxu1 %v2317_v8 }
 0x4cd   :  { %4270 = vmatpush3.msra.mxu1 %v2317_v8 }
 0x4ce   :  { %4489 = vmatprep.subr.bf16.mxu1 %v6214_v12 }
 0x4db   :  { %v2148_v15 = vpop.permute.xlu0 %2147 }
 0x4dc   :  { %4255 = vmatprep.subr.mxu0 %v2148_v15 }
 0x4dd   :  { %4256 = vmatpush3.msra.mxu0 %v2148_v15 }
 0x4de   :  { %4473 = vmatprep.subr.bf16.mxu0 %v6214_v12 }
 0x502   :  { %v2299_v38 = vpop.trf.xlu1 }
 0x503   :  { %4271 = vmatprep.mubr.msk.f32.mxu1 %vm418_vm1, %v2299_v38 }
 0x506   :  { %v2300_v26 = vpop.trf.xlu1 }
 0x507   :  { %v2130_v4 = vpop.trf.xlu0  ;;  %4272 = vmatmul.mubr.msk.f32.vlgmr.msra.gmra.mrb[36].mxu1 %vm418_vm1, %v2300_v26 }
 0x508   :  { %4257 = vmatprep.mubr.msk.f32.mxu0 %vm418_vm1, %v2130_v4 }
 0x50a   :  { %v2301_v45 = vpop.trf.xlu1 }
 0x50b   :  { %v2131_v34 = vpop.trf.xlu0  ;;  %4274 = vmatprep.mubr.msk.f32.mxu1 %vm418_vm1, %v2301_v45 }
 0x50c   :  { %4258 = vmatmul.mubr.msk.f32.vlgmr.msra.gmra.mrb[32].mxu0 %vm418_vm1, %v2131_v34 }
 0x50e   :  { %v2302_v58 = vpop.trf.xlu1 }
 0x50f   :  { %v2132_v18 = vpop.trf.xlu0  ;;  %4275 = vmatmul.mubr.msk.f32.gmra.mrb[38].mxu1 %vm418_vm1, %v2302_v58 }
 0x510   :  { %4260 = vmatprep.mubr.msk.f32.mxu0 %vm418_vm1, %v2132_v18 }
 0x512   :  { %v2303_v9 = vpop.trf.xlu1 }
 0x513   :  { %v2133_v52 = vpop.trf.xlu0  ;;  %4277 = vmatprep.mubr.msk.f32.mxu1 %vm418_vm1, %v2303_v9 }
 0x514   :  { %4261 = vmatmul.mubr.msk.f32.gmra.mrb[34].mxu0 %vm418_vm1, %v2133_v52 }
 0x516   :  { %v5599_v30 = vpop.f32.mrb[20].mxu0  ;;  %v2304_v61 = vpop.trf.xlu1 }
 0x517   :  { %v4169_v10 = vpop.f32.mrb[21].mxu0  ;;  %v2134_v21 = vpop.trf.xlu0  ;;  %4278 = vmatmul.mubr.msk.f32.gmra.mrb[40].mxu1 %vm418_vm1, %v2304_v61 }
 0x518   :  { %4263 = vmatprep.mubr.msk.f32.mxu0 %vm418_vm1, %v2134_v21 }
 0x51a   :  { %v2305_v14 = vpop.trf.xlu1 }
 0x51b   :  { %v2135_v62 = vpop.trf.xlu0  ;;  %4280 = vmatprep.mubr.msk.f32.mxu1 %vm418_vm1, %v2305_v14 }
 0x51c   :  { %4264 = vmatmul.mubr.msk.f32.gmra.mrb[36].mxu0 %vm418_vm1, %v2135_v62 }
 0x51e   :  { %v2306_v60 = vpop.trf.xlu1 }
 0x51f   :  { %v2136_v19 = vpop.trf.xlu0  ;;  %4281 = vmatmul.mubr.msk.f32.gmra.mrb[42].mxu1 %vm418_vm1, %v2306_v60 }
 0x520   :  { %4266 = vmatprep.mubr.msk.f32.mxu0 %vm418_vm1, %v2136_v19  ;;  %4318 = vmatprep.mubr.msk.f32.mxu1 %vm4884_vm3, %v6212_v55 }
 0x523   :  { %v2137_v53 = vpop.trf.xlu0 }
 0x524   :  { %4267 = vmatmul.mubr.msk.f32.gmra.mrb[38].mxu0 %vm418_vm1, %v2137_v53 }
 0x525   :  { %4299 = vmatprep.mubr.msk.f32.mxu0 %vm4884_vm3, %v6212_v55 }
 0x547   :  { %v5612_v16 = vpop.f32.mrb[22].mxu0 }
 0x548   :  { %v4207_v37 = vpop.f32.mrb[23].mxu0 }
 0x566   :  { %v5614_v17 = vpop.f32.mrb[24].mxu1 }
 0x567   :  { %v4188_v63 = vpop.f32.mrb[25].mxu1 }
 0x57c   :  { %v5616_v31 = vpop.f32.mrb[24].mxu0 }
 0x57d   :  { %v5618_v44 = vpop.f32.mrb[25].mxu0  ;;  %v2451_v49 = vsel %vm1031_vm2, %v5616_v31, -inf }
 0x57e   :  { %2452 = vmax.xlane.f32.xlu1 %v2451_v49  ;;  %v2448_v5 = vsel %vm1031_vm2, %v5618_v44, -inf }
 0x57f   :  { %2449 = vmax.xlane.f32.xlu0 %v2448_v5 }
 0x584   :  { %v5624_v59 = vpop.f32.mrb[26].mxu0 }
 0x585   :  { %v5626_v43 = vpop.f32.mrb[27].mxu0  ;;  %v2457_v41 = vsel %vm1031_vm2, %v5624_v59, -inf }
 0x586   :  { %v5628_v28 = vpop.f32.mrb[26].mxu1  ;;  %v2454_v51 = vsel %vm1031_vm2, %v5626_v43, -inf }
 0x587   :  { %v4226_v1 = vpop.f32.mrb[27].mxu1  ;;  %2455 = vmax.xlane.f32.xlu1 %v2454_v51 }
 0x58a   :  { %v5632_v6 = vpop.f32.mrb[28].mxu1 }
 0x58b   :  { %v2475_v0 = vsel %vm1031_vm2, %v5632_v6, -inf  ;;  %v5636_v23 = vpop.f32.mrb[29].mxu1 }
 0x58c   :  { %2476 = vmax.xlane.f32.xlu0 %v2475_v0  ;;  %v5638_v11 = vpop.f32.mrb[28].mxu0  ;;  %v2472_v35 = vsel %vm1031_vm2, %v5636_v23, -inf }
 0x58d   :  { %v5640_v24 = vpop.f32.mrb[29].mxu0  ;;  %v2463_v36 = vsel %vm1031_vm2, %v5638_v11, -inf }
 0x58e   :  { %v2460_v20 = vsel %vm1031_vm2, %v5640_v24, -inf  ;;  %v5646_v57 = vpop.f32.mrb[30].mxu1 }
 0x58f   :  { %2461 = vmax.xlane.f32.xlu1 %v2460_v20  ;;  %v5648_v29 = vpop.f32.mrb[31].mxu1  ;;  %v2481_v56 = vsel %vm1031_vm2, %v5646_v57, -inf }
 0x590   :  { %2473 = vmax.xlane.f32.xlu0 %v2472_v35  ;;  %v2478_v39 = vsel %vm1031_vm2, %v5648_v29, -inf }
 0x592   :  { %v5652_v32 = vpop.f32.mrb[32].mxu1 }
 0x593   :  { %v5654_v7 = vpop.f32.mrb[33].mxu1  ;;  %v2487_v47 = vsel %vm1031_vm2, %v5652_v32, -inf }
 0x594   :  { %2458 = vmax.xlane.f32.xlu0 %v2457_v41  ;;  %v5656_v50 = vpop.f32.mrb[30].mxu0  ;;  %v2484_v18 = vsel %vm1031_vm2, %v5654_v7, -inf }
 0x595   :  { %v5658_v2 = vpop.f32.mrb[31].mxu0  ;;  %v2469_v46 = vsel %vm1031_vm2, %v5656_v50, -inf }
 0x596   :  { %v2466_v54 = vsel %vm1031_vm2, %v5658_v2, -inf  ;;  %v5664_v42 = vpop.f32.mrb[34].mxu1 }
 0x597   :  { %2467 = vmax.xlane.f32.xlu1 %v2466_v54  ;;  %v5666_v3 = vpop.f32.mrb[35].mxu1  ;;  %v2493_v40 = vsel %vm1031_vm2, %v5664_v42, -inf }
 0x598   :  { %2482 = vmax.xlane.f32.xlu0 %v2481_v56  ;;  %v2490_v60 = vsel %vm1031_vm2, %v5666_v3, -inf }
 0x59b   :  { %2479 = vmax.xlane.f32.xlu1 %v2478_v39 }
 0x59c   :  { %2464 = vmax.xlane.f32.xlu0 %v2463_v36 }
 0x5a0   :  { %2488 = vmax.xlane.f32.xlu0 %v2487_v47 }
 0x5a4   :  { %2470 = vmax.xlane.f32.xlu0 %v2469_v46 }
 0x5a8   :  { %2494 = vmax.xlane.f32.xlu0 %v2493_v40 }
 0x5da   :  { %v5678_v48 = vpop.f32.mrb[36].mxu1 }
 0x5db   :  { %v5680_v8 = vpop.f32.mrb[37].mxu1  ;;  %v2523_v45 = vsel %vm1031_vm2, %v5678_v48, -inf }
 0x5dc   :  { %v2520_v51 = vsel %vm1031_vm2, %v5680_v8, -inf }
 0x5df   :  { %v5682_v15 = vpop.f32.mrb[32].mxu0 }
 0x5e0   :  { %v5684_v38 = vpop.f32.mrb[33].mxu0  ;;  %v2499_v26 = vsel %vm1031_vm2, %v5682_v15, -inf }
 0x5e1   :  { %2500 = vmax.xlane.f32.xlu0 %v2499_v26  ;;  %v2496_v4 = vsel %vm1031_vm2, %v5684_v38, -inf }
 0x5e2   :  { %2497 = vmax.xlane.f32.xlu1 %v2496_v4  ;;  %v5692_v34 = vpop.f32.mrb[38].mxu1 }
 0x5e3   :  { %v5694_v58 = vpop.f32.mrb[39].mxu1  ;;  %v2529_v21 = vsel %vm1031_vm2, %v5692_v34, -inf }
 0x5e4   :  { %v2526_v54 = vsel %vm1031_vm2, %v5694_v58, -inf }
 0x5e5   :  { %2524 = vmax.xlane.f32.xlu0 %v2523_v45 }
 0x5e6   :  { %2485 = vmax.xlane.f32.xlu1 %v2484_v18 }
 0x5e7   :  { %v5698_v9 = vpop.f32.mrb[34].mxu0 }
 0x5e8   :  { %v5700_v52 = vpop.f32.mrb[35].mxu0  ;;  %v2505_v61 = vsel %vm1031_vm2, %v5698_v9, -inf }
 0x5e9   :  { %2506 = vmax.xlane.f32.xlu0 %v2505_v61  ;;  %v2502_v10 = vsel %vm1031_vm2, %v5700_v52, -inf }
 0x5ea   :  { %2503 = vmax.xlane.f32.xlu1 %v2502_v10  ;;  %v5708_v14 = vpop.f32.mrb[40].mxu1 }
 0x5eb   :  { %v5710_v62 = vpop.f32.mrb[41].mxu1  ;;  %v2535_v49 = vsel %vm1031_vm2, %v5708_v14, -inf }
 0x5ed   :  { %2530 = vmax.xlane.f32.xlu0 %v2529_v21 }
 0x5ee   :  { %2491 = vmax.xlane.f32.xlu1 %v2490_v60 }
 0x5ef   :  { %v5714_v19 = vpop.f32.mrb[36].mxu0 }
 0x5f0   :  { %v5716_v53 = vpop.f32.mrb[37].mxu0  ;;  %v2511_v37 = vsel %vm1031_vm2, %v5714_v19, -inf }
 0x5f1   :  { %2512 = vmax.xlane.f32.xlu0 %v2511_v37  ;;  %v2508_v63 = vsel %vm1031_vm2, %v5716_v53, -inf }
 0x5f2   :  { %2509 = vmax.xlane.f32.xlu1 %v2508_v63  ;;  %v5724_v5 = vpop.f32.mrb[42].mxu1 }
 0x5f3   :  { %v5728_v1 = vpop.f32.mrb[43].mxu1  ;;  %v2541_v56 = vsel %vm1031_vm2, %v5724_v5, -inf }
 0x5f5   :  { %2536 = vmax.xlane.f32.xlu0 %v2535_v49 }
 0x5f6   :  { %2521 = vmax.xlane.f32.xlu1 %v2520_v51 }
 0x5f7   :  { %v5730_v0 = vpop.f32.mrb[38].mxu0 }
 0x5f8   :  { %v5732_v35 = vpop.f32.mrb[39].mxu0  ;;  %v2517_v20 = vsel %vm1031_vm2, %v5730_v0, -inf }
 0x5f9   :  { %2518 = vmax.xlane.f32.xlu0 %v2517_v20  ;;  %v2514_v41 = vsel %vm1031_vm2, %v5732_v35, -inf }
 0x5fa   :  { %2515 = vmax.xlane.f32.xlu1 %v2514_v41 }
 0x5fd   :  { %2542 = vmax.xlane.f32.xlu0 %v2541_v56 }
 0x5fe   :  { %2527 = vmax.xlane.f32.xlu1 %v2526_v54 }
 0x60b   :  { %v2453_v39 = vpop.xlane.xlu1 %2452 }
 0x60c   :  { %v2545_v36 = vsub.f32 %v5616_v31, %v2453_v39  ;;  %v2450_v46 = vpop.xlane.xlu0 %2449 }
 0x60d   :  { %v2544_v21 = vsub.f32 %v5618_v44, %v2450_v46 }
 0x60e   :  { %v2578_v47 = vmul.f32 1.442695, %v2545_v36 }
 0x60f   :  { %2800 = vrot.lane.b32.xlu1 %v5140_v22, %s4882_s16  ;;  %v2576_v49 = vmul.f32 1.442695, %v2544_v21  ;;  %v2538_v21 = vsel %vm1031_vm2, %v5728_v1, -inf }
 0x610   :  { %4715 = vpow2.f32 %v2578_v47 }
 0x614   :  { %v2456_v37 = vpop.xlane.xlu1 %2455 }
 0x615   :  { %v2546_v51 = vsub.f32 %v5626_v43, %v2456_v37 }
 0x619   :  { %v5745_v40 = vpop.xlane.xlu0 %2476 }
 0x61a   :  { %v5747_v26 = vpop.eup %4715  ;;  %v2553_v4 = vsub.f32 %v5632_v6, %v5745_v40 }
 0x61b   :  { %v2643_v45 = vsel %vm1031_vm2, %v5747_v26, 0.0 }
 0x61c   :  { %2644 = vadd.xlane.f32.xlu0 %v2643_v45  ;;  %v2462_v41 = vpop.xlane.xlu1 %2461 }
 0x61d   :  { %v5753_v18 = vpop.xlane.xlu0 %2473  ;;  %v2548_v39 = vsub.f32 %v5640_v24, %v2462_v41  ;;  %v2532_v24 = vsel %vm1031_vm2, %v5710_v62, -inf }
 0x61e   :  { %v2552_v31 = vsub.f32 %v5636_v23, %v5753_v18 }
 0x61f   :  { %v2584_v43 = vmul.f32 1.442695, %v2548_v39 }
 0x621   :  { %v2459_v61 = vpop.xlane.xlu0 %2458 }
 0x622   :  { %v2547_v22 = vsub.f32 %v5624_v59, %v2459_v61  ;;  %v2580_v59 = vmul.f32 1.442695, %v2546_v51 }
 0x624   :  { %v2582_v10 = vmul.f32 1.442695, %v2547_v22  ;;  %v2468_v36 = vpop.xlane.xlu1 %2467 }
 0x625   :  { %v5759_v60 = vpop.xlane.xlu0 %2482  ;;  %v2550_v45 = vsub.f32 %v5658_v2, %v2468_v36 }
 0x626   :  { %4717 = vpow2.f32 %v2582_v10  ;;  %v2555_v63 = vsub.f32 %v5646_v57, %v5759_v60 }
 0x627   :  { %4719 = vpow2.f32 %v2576_v49  ;;  %v2588_v37 = vmul.f32 1.442695, %v2550_v45 }
 0x629   :  { %v2465_v20 = vpop.xlane.xlu0 %2464 }
 0x62a   :  { %v2549_v56 = vsub.f32 %v5638_v11, %v2465_v20 }
 0x62c   :  { %v2586_v54 = vmul.f32 1.442695, %v2549_v56 }
 0x62d   :  { %v5766_v44 = vpop.xlane.xlu0 %2488 }
 0x62e   :  { %4721 = vpow2.f32 %v2586_v54 }
 0x62f   :  { %4723 = vpow2.f32 %v2580_v59 }
 0x630   :  { %v5770_v46 = vpop.eup %4717  ;;  %4725 = vpow2.f32 %v2584_v43 }
 0x631   :  { %v2471_v61 = vpop.xlane.xlu0 %2470  ;;  %v2649_v11 = vsel %vm1031_vm2, %v5770_v46, 0.0  ;;  %v5780_v49 = vpop.eup %4719 }
 0x632   :  { %v2551_v22 = vsub.f32 %v5656_v50, %v2471_v61  ;;  %2650 = vadd.xlane.f32.xlu0 %v2649_v11  ;;  %v2640_v51 = vsel %vm1031_vm2, %v5780_v49, 0.0  ;;  %v2480_v61 = vpop.xlane.xlu1 %2479 }
 0x633   :  { %2533 = vmax.xlane.f32.xlu1 %v2532_v24  ;;  %v2554_v6 = vsub.f32 %v5648_v29, %v2480_v61 }
 0x634   :  { %v2590_v10 = vmul.f32 1.442695, %v2551_v22 }
 0x635   :  { %v5804_v45 = vpop.xlane.xlu0 %2494  ;;  %v2596_v29 = vmul.f32 1.442695, %v2554_v6 }
 0x636   :  { %4727 = vpow2.f32 %v2590_v10 }
 0x637   :  { %2539 = vmax.xlane.f32.xlu1 %v2538_v21  ;;  %4729 = vpow2.f32 %v2588_v37 }
 0x638   :  { %v5782_v2 = vpop.eup %4721 }
 0x639   :  { %v2655_v50 = vsel %vm1031_vm2, %v5782_v2, 0.0  ;;  %v5788_v20 = vpop.eup %4723 }
 0x63a   :  { %2656 = vadd.xlane.f32.xlu0 %v2655_v50  ;;  %v2646_v41 = vsel %vm1031_vm2, %v5788_v20, 0.0  ;;  %v5792_v56 = vpop.eup %4725 }
 0x63b   :  { %2641 = vadd.xlane.f32.xlu1 %v2640_v51  ;;  %v2652_v39 = vsel %vm1031_vm2, %v5792_v56, 0.0 }
 0x63f   :  { %2647 = vadd.xlane.f32.xlu1 %v2646_v41 }
 0x640   :  { %v5794_v54 = vpop.eup %4727 }
 0x641   :  { %v2661_v59 = vsel %vm1031_vm2, %v5794_v54, 0.0  ;;  %v5800_v36 = vpop.eup %4729 }
 0x642   :  { %2662 = vadd.xlane.f32.xlu0 %v2661_v59  ;;  %v2658_v43 = vsel %vm1031_vm2, %v5800_v36, 0.0 }
 0x643   :  { %2653 = vadd.xlane.f32.xlu1 %v2652_v39 }
 0x647   :  { %2659 = vadd.xlane.f32.xlu1 %v2658_v43 }
 0x66e   :  { %v2501_v11 = vpop.xlane.xlu0 %2500 }
 0x66f   :  { %v2561_v22 = vsub.f32 %v5682_v15, %v2501_v11  ;;  %v2498_v24 = vpop.xlane.xlu1 %2497 }
 0x670   :  { %v2560_v10 = vsub.f32 %v5684_v38, %v2498_v24 }
 0x671   :  { %v2610_v21 = vmul.f32 1.442695, %v2561_v22 }
 0x672   :  { %v2608_v37 = vmul.f32 1.442695, %v2560_v10  ;;  %v5808_v50 = vpop.xlane.xlu0 %2524 }
 0x673   :  { %4731 = vpow2.f32 %v2610_v21  ;;  %v2486_v51 = vpop.xlane.xlu1 %2485 }
 0x674   :  { %4733 = vpow2.f32 %v2608_v37  ;;  %v2592_v37 = vmul.f32 1.442695, %v2552_v31  ;;  %v2556_v61 = vsub.f32 %v5654_v7, %v2486_v51 }
 0x676   :  { %v2507_v41 = vpop.xlane.xlu0 %2506  ;;  %v2600_v57 = vmul.f32 1.442695, %v2556_v61 }
 0x677   :  { %v2563_v59 = vsub.f32 %v5698_v9, %v2507_v41  ;;  %v2504_v39 = vpop.xlane.xlu1 %2503 }
 0x678   :  { %v2562_v43 = vsub.f32 %v5700_v52, %v2504_v39 }
 0x679   :  { %v2614_v55 = vmul.f32 1.442695, %v2563_v59 }
 0x67a   :  { %v2612_v12 = vmul.f32 1.442695, %v2562_v43  ;;  %v5812_v47 = vpop.xlane.xlu0 %2530 }
 0x67b   :  { %4735 = vpow2.f32 %v2614_v55  ;;  %v2492_v15 = vpop.xlane.xlu1 %2491 }
 0x67c   :  { %4737 = vpow2.f32 %v2612_v12  ;;  %v2594_v12 = vmul.f32 1.442695, %v2553_v4  ;;  %v2558_v60 = vsub.f32 %v5666_v3, %v2492_v15 }
 0x67d   :  { %v5814_v38 = vpop.eup %4731 }
 0x67e   :  { %v5816_v11 = vpop.eup %4733  ;;  %v2513_v22 = vpop.xlane.xlu0 %2512  ;;  %v2691_v24 = vsel %vm1031_vm2, %v5814_v38, 0.0 }
 0x67f   :  { %v2565_v9 = vsub.f32 %v5714_v19, %v2513_v22  ;;  %v2510_v10 = vpop.xlane.xlu1 %2509  ;;  %2692 = vadd.xlane.f32.xlu0 %v2691_v24  ;;  %v2688_v52 = vsel %vm1031_vm2, %v5816_v11, 0.0  ;;  %v2598_v22 = vmul.f32 1.442695, %v2555_v63 }
 0x680   :  { %v2564_v21 = vsub.f32 %v5716_v53, %v2510_v10  ;;  %2689 = vadd.xlane.f32.xlu1 %v2688_v52  ;;  %v6218_v10 = vsub.f32 %v5652_v32, %v5766_v44  ;;  %v2569_v44 = vsub.f32 %v5678_v48, %v5808_v50  ;;  %v2571_v48 = vsub.f32 %v5692_v34, %v5812_v47 }
 0x681   :  { %v2618_v55 = vmul.f32 1.442695, %v2565_v9 }
 0x682   :  { %v2616_v41 = vmul.f32 1.442695, %v2564_v21  ;;  %v5830_v59 = vpop.xlane.xlu0 %2536  ;;  %v2602_v52 = vmul.f32 1.442695, %v6218_v10  ;;  %v2630_v34 = vmul.f32 1.442695, %v2571_v48 }
 0x683   :  { %4739 = vpow2.f32 %v2618_v55  ;;  %v2522_v19 = vpop.xlane.xlu1 %2521  ;;  %v2573_v47 = vsub.f32 %v5708_v14, %v5830_v59 }
 0x684   :  { %4741 = vpow2.f32 %v2616_v41  ;;  %v2568_v3 = vsub.f32 %v5680_v8, %v2522_v19  ;;  %v2626_v41 = vmul.f32 1.442695, %v2569_v44 }
 0x685   :  { %v5832_v39 = vpop.eup %4735  ;;  %4743 = vpow2.f32 %v2594_v12 }
 0x686   :  { %v5834_v53 = vpop.eup %4737  ;;  %4745 = vpow2.f32 %v2592_v37  ;;  %v2519_v40 = vpop.xlane.xlu0 %2518  ;;  %v2697_v4 = vsel %vm1031_vm2, %v5832_v39, 0.0  ;;  %v2624_v8 = vmul.f32 1.442695, %v2568_v3 }
 0x687   :  { %v2567_v23 = vsub.f32 %v5730_v0, %v2519_v40  ;;  %v2516_v18 = vpop.xlane.xlu1 %2515  ;;  %2698 = vadd.xlane.f32.xlu0 %v2697_v4  ;;  %v2694_v31 = vsel %vm1031_vm2, %v5834_v53, 0.0 }
 0x688   :  { %v2566_v43 = vsub.f32 %v5732_v35, %v2516_v18  ;;  %2695 = vadd.xlane.f32.xlu1 %v2694_v31  ;;  %v2559_v35 = vsub.f32 %v5664_v42, %v5804_v45  ;;  %v2604_v45 = vmul.f32 1.442695, %v2558_v60 }
 0x689   :  { %v2622_v24 = vmul.f32 1.442695, %v2567_v23 }
 0x68a   :  { %v2620_v9 = vmul.f32 1.442695, %v2566_v43  ;;  %v2606_v42 = vmul.f32 1.442695, %v2559_v35  ;;  %v2543_v18 = vpop.xlane.xlu0 %2542 }
 0x68b   :  { %4747 = vpow2.f32 %v2622_v24  ;;  %v2528_v12 = vpop.xlane.xlu1 %2527  ;;  %v2575_v61 = vsub.f32 %v5724_v5, %v2543_v18 }
 0x68c   :  { %4749 = vpow2.f32 %v2620_v9  ;;  %v2570_v19 = vsub.f32 %v5694_v58, %v2528_v12 }
 0x68d   :  { %v5847_v0 = vpop.eup %4739  ;;  %4751 = vpow2.f32 %v2598_v22 }
 0x68e   :  { %v5854_v21 = vpop.eup %4741  ;;  %4753 = vpow2.f32 %v2596_v29  ;;  %v2703_v7 = vsel %vm1031_vm2, %v5847_v0, 0.0  ;;  %v2628_v58 = vmul.f32 1.442695, %v2570_v19  ;;  %v2634_v29 = vmul.f32 1.442695, %v2573_v47 }
 0x68f   :  { %v5859_v63 = vpop.eup %4743  ;;  %2704 = vadd.xlane.f32.xlu0 %v2703_v7  ;;  %v2700_v51 = vsel %vm1031_vm2, %v5854_v21, 0.0  ;;  %4755 = vpow2.f32 %v2602_v52  ;;  %v2638_v52 = vmul.f32 1.442695, %v2575_v61  ;;  %v2801_v48 = vpop.permute.xlu1 %2800 }
 0x690   :  { %v5863_v32 = vpop.eup %4745  ;;  %2701 = vadd.xlane.f32.xlu1 %v2700_v51  ;;  %4757 = vpow2.f32 %v2600_v57  ;;  %v2667_v15 = vsel %vm1031_vm2, %v5859_v63, 0.0 }
 0x691   :  { %v2664_v55 = vsel %vm1031_vm2, %v5863_v32, 0.0  ;;  %4759 = vpow2.f32 %v2606_v42 }
 0x692   :  { %4761 = vpow2.f32 %v2604_v45 }
 0x693   :  { %2668 = vadd.xlane.f32.xlu0 %v2667_v15  ;;  %4763 = vpow2.f32 %v2626_v41 }
 0x694   :  { %2665 = vadd.xlane.f32.xlu1 %v2664_v55  ;;  %4765 = vpow2.f32 %v2624_v8 }
 0x695   :  { %v5872_v37 = vpop.eup %4747  ;;  %4767 = vpow2.f32 %v2630_v34 }
 0x696   :  { %v5876_v50 = vpop.eup %4749  ;;  %v2709_v6 = vsel %vm1031_vm2, %v5872_v37, 0.0  ;;  %4769 = vpow2.f32 %v2628_v58 }
 0x697   :  { %v5881_v40 = vpop.eup %4751  ;;  %2710 = vadd.xlane.f32.xlu0 %v2709_v6  ;;  %v2706_v4 = vsel %vm1031_vm2, %v5876_v50, 0.0  ;;  %4771 = vpow2.f32 %v2634_v29 }
 0x698   :  { %v5885_v23 = vpop.eup %4753  ;;  %2707 = vadd.xlane.f32.xlu1 %v2706_v4  ;;  %v2673_v31 = vsel %vm1031_vm2, %v5881_v40, 0.0  ;;  %4773 = vpow2.f32 %v2638_v52 }
 0x699   :  { %v5891_v43 = vpop.eup %4755  ;;  %v2670_v22 = vsel %vm1031_vm2, %v5885_v23, 0.0 }
 0x69a   :  { %v5895_v24 = vpop.eup %4757  ;;  %v2679_v14 = vsel %vm1031_vm2, %v5891_v43, 0.0 }
 0x69b   :  { %2674 = vadd.xlane.f32.xlu0 %v2673_v31  ;;  %v5900_v59 = vpop.eup %4759  ;;  %v2676_v9 = vsel %vm1031_vm2, %v5895_v24, 0.0 }
 0x69c   :  { %2671 = vadd.xlane.f32.xlu1 %v2670_v22  ;;  %v5904_v10 = vpop.eup %4761  ;;  %v2685_v35 = vsel %vm1031_vm2, %v5900_v59, 0.0 }
 0x69d   :  { %v5908_v57 = vpop.eup %4763  ;;  %v2682_v5 = vsel %vm1031_vm2, %v5904_v10, 0.0 }
 0x69e   :  { %v5912_v60 = vpop.eup %4765  ;;  %v2715_v7 = vsel %vm1031_vm2, %v5908_v57, 0.0 }
 0x69f   :  { %2680 = vadd.xlane.f32.xlu0 %v2679_v14  ;;  %v5916_v51 = vpop.eup %4767  ;;  %v2712_v42 = vsel %vm1031_vm2, %v5912_v60, 0.0 }
 0x6a0   :  { %2677 = vadd.xlane.f32.xlu1 %v2676_v9  ;;  %v5920_v44 = vpop.eup %4769  ;;  %v2721_v45 = vsel %vm1031_vm2, %v5916_v51, 0.0 }
 0x6a1   :  { %v5924_v3 = vpop.eup %4771  ;;  %v2718_v15 = vsel %vm1031_vm2, %v5920_v44, 0.0 }
 0x6a2   :  { %v2727_v12 = vsel %vm1031_vm2, %v5924_v3, 0.0  ;;  %v5930_v55 = vpop.eup %4773 }
 0x6a3   :  { %2686 = vadd.xlane.f32.xlu0 %v2685_v35  ;;  %v2733_v41 = vsel %vm1031_vm2, %v5930_v55, 0.0 }
 0x6a4   :  { %2683 = vadd.xlane.f32.xlu1 %v2682_v5 }
 0x6a7   :  { %2716 = vadd.xlane.f32.xlu0 %v2715_v7  ;;  %v6219_v7 = vmov 0.0|0.0  }
 0x6a8   :  { %2713 = vadd.xlane.f32.xlu1 %v2712_v42 }
 0x6a9   :  { %v2645_v34 = vpop.xlane.xlu0 %2644 }
 0x6ab   :  { %2722 = vadd.xlane.f32.xlu0 %v2721_v45 }
 0x6ac   :  { %2719 = vadd.xlane.f32.xlu1 %v2718_v15 }
 0x6af   :  { %2728 = vadd.xlane.f32.xlu0 %v2727_v12 }
 0x6b3   :  { %2734 = vadd.xlane.f32.xlu0 %v2733_v41 }
 0x6bf   :  { %v2651_v58 = vpop.xlane.xlu0 %2650 }
 0x6c0   :  { %v2534_v8 = vpop.xlane.xlu1 %2533 }
 0x6c1   :  { %v2572_v19 = vsub.f32 %v5710_v62, %v2534_v8 }
 0x6c3   :  { %v2632_v6 = vmul.f32 1.442695, %v2572_v19 }
 0x6c4   :  { %v2540_v4 = vpop.xlane.xlu1 %2539 }
 0x6c5   :  { %4775 = vpow2.f32 %v2632_v6 }
 0x6c6   :  { %4777 = vrcp.f32 %v2645_v34 }
 0x6c7   :  { %v2657_v9 = vpop.xlane.xlu0 %2656 }
 0x6c8   :  { %v2642_v47 = vpop.xlane.xlu1 %2641 }
 0x6c9   :  { %2898 = vrot.lane.b32.xlu0 %v5148_v27, %s4882_s16  ;;  %4779 = vrcp.f32 %v2642_v47 }
 0x6cc   :  { %v2648_v18 = vpop.xlane.xlu1 %2647 }
 0x6cd   :  { %4781 = vrcp.f32 %v2648_v18 }
 0x6ce   :  { %4783 = vrcp.f32 %v2651_v58 }
 0x6cf   :  { %v5937_v31 = vpop.eup %4775  ;;  %v2663_v12 = vpop.xlane.xlu0 %2662 }
 0x6d0   :  { %v2724_v22 = vsel %vm1031_vm2, %v5937_v31, 0.0  ;;  %v4778_v62 = vpop.eup %4777  ;;  %v2654_v29 = vpop.xlane.xlu1 %2653 }
 0x6d1   :  { %2725 = vadd.xlane.f32.xlu1 %v2724_v22  ;;  %v2769_v14 = vmul.f32 %v4778_v62, %v5747_v26  ;;  %4785 = vrcp.f32 %v2654_v29 }
 0x6d2   :  { %4787 = vrcp.f32 %v2657_v9 }
 0x6d3   :  { %v4780_v61 = vpop.eup %4779 }
 0x6d4   :  { %v2768_v52 = vmul.f32 %v4780_v61, %v5780_v49  ;;  %v2660_v45 = vpop.xlane.xlu1 %2659 }
 0x6d5   :  { %4789 = vrcp.f32 %v2660_v45 }
 0x6d6   :  { %v4474_v27 = vpack.c.bf16 %v2769_v14, %v2768_v52  ;;  %4791 = vrcp.f32 %v2663_v12 }
 0x6d7   :  { %v4782_v35 = vpop.eup %4781 }
 0x6d8   :  { %4476 = vmatpush3.bf16.xpose.msk.msra.mxu0 %vm5464_vm4, %v4474_v27  ;;  %v4784_v5 = vpop.eup %4783  ;;  %v2770_v42 = vmul.f32 %v4782_v35, %v5788_v20 }
 0x6d9   :  { %4477 = vmatprep.subr.bf16.mxu0 %v6219_v7  ;;  %v2771_v15 = vmul.f32 %v4784_v5, %v5770_v46 }
 0x6db   :  { %v4478_v26 = vpack.c.bf16 %v2771_v15, %v2770_v42  ;;  %v4786_v41 = vpop.eup %4785 }
 0x6dc   :  { %v4788_v49 = vpop.eup %4787  ;;  %v2772_v8 = vmul.f32 %v4786_v41, %v5792_v56  ;;  %v6220_v56 = vmov 0.0  }
 0x6dd   :  { %v2773_v20 = vmul.f32 %v4788_v49, %v5782_v2 }
 0x6df   :  { %v4482_v19 = vpack.c.bf16 %v2773_v20, %v2772_v8  ;;  %v4790_v46 = vpop.eup %4789 }
 0x6e0   :  { %4480 = vmatpush3.bf16.xpose.msk.msra.mxu0 %vm5464_vm4, %v4478_v26  ;;  %v4792_v6 = vpop.eup %4791  ;;  %v2774_v34 = vmul.f32 %v4790_v46, %v5800_v36 }
 0x6e1   :  { %4481 = vmatprep.subr.bf16.mxu0 %v6219_v7  ;;  %v2775_v47 = vmul.f32 %v4792_v6, %v5794_v54 }
 0x6e2   :  { %2996 = vrot.lane.b32.xlu1 %v5145_v25, %s4882_s16  ;;  %v2574_v25 = vsub.f32 %v5728_v1, %v2540_v4 }
 0x6e3   :  { %v4486_v18 = vpack.c.bf16 %v2775_v47, %v2774_v34 }
 0x6e4   :  { %v2636_v2 = vmul.f32 1.442695, %v2574_v25 }
 0x6e6   :  { %4793 = vpow2.f32 %v2636_v2 }
 0x6e8   :  { %4484 = vmatpush3.bf16.xpose.msk.msra.mxu0 %vm5464_vm4, %v4482_v19 }
 0x6e9   :  { %4485 = vmatprep.subr.bf16.mxu0 %v6219_v7 }
 0x6f0   :  { %4488 = vmatpush3.bf16.xpose.msk.msra.mxu0 %vm5464_vm4, %v4486_v18  ;;  %v5967_v58 = vpop.eup %4793 }
 0x6f1   :  { %4505 = vmatprep.subr.bf16.mxu0 %v6219_v7  ;;  %v2730_v54 = vsel %vm1031_vm2, %v5967_v58, 0.0 }
 0x6f7   :  { %4300 = vmatmul.mubr.msk.f32.vlgmr.msra.gmra.mrb[40].mxu0 %vm1031_vm2, %v2801_v48 }
 0x6f8   :  { %4337 = vmatprep.mubr.msk.f32.mxu0 %vm4884_vm3, %v6220_v56 }
 0x706   :  { %2731 = vadd.xlane.f32.xlu1 %v2730_v54 }
 0x70c   :  { %v2693_v36 = vpop.xlane.xlu0 %2692 }
 0x70d   :  { %4795 = vrcp.f32 %v2693_v36  ;;  %v2690_v1 = vpop.xlane.xlu1 %2689 }
 0x70e   :  { %4797 = vrcp.f32 %v2690_v1 }
 0x714   :  { %v2699_v4 = vpop.xlane.xlu0 %2698 }
 0x715   :  { %4799 = vrcp.f32 %v2699_v4  ;;  %v2696_v22 = vpop.xlane.xlu1 %2695 }
 0x716   :  { %4801 = vrcp.f32 %v2696_v22 }
 0x717   :  { %v4796_v62 = vpop.eup %4795  ;;  %3094 = vrot.lane.b32.xlu1 %v5570_v33, %s4882_s16 }
 0x718   :  { %v4798_v48 = vpop.eup %4797  ;;  %v2785_v29 = vmul.f32 %v4796_v62, %v5814_v38 }
 0x719   :  { %v2784_v61 = vmul.f32 %v4798_v48, %v5816_v11 }
 0x71b   :  { %v4506_v14 = vpack.c.bf16 %v2785_v29, %v2784_v61 }
 0x71c   :  { %v2705_v9 = vpop.xlane.xlu0 %2704 }
 0x71d   :  { %4803 = vrcp.f32 %v2705_v9  ;;  %v2702_v52 = vpop.xlane.xlu1 %2701  ;;  %4508 = vmatpush3.bf16.xpose.msk.msra.mxu0 %vm5464_vm4, %v4506_v14 }
 0x71e   :  { %4805 = vrcp.f32 %v2702_v52  ;;  %4509 = vmatprep.subr.bf16.mxu0 %v6219_v7 }
 0x71f   :  { %v4800_v27 = vpop.eup %4799 }
 0x720   :  { %v4802_v35 = vpop.eup %4801  ;;  %v2787_v5 = vmul.f32 %v4800_v27, %v5832_v39  ;;  %v2669_v33 = vpop.xlane.xlu0 %2668 }
 0x721   :  { %v2786_v42 = vmul.f32 %v4802_v35, %v5834_v53  ;;  %4807 = vrcp.f32 %v2669_v33  ;;  %v2666_v38 = vpop.xlane.xlu1 %2665 }
 0x722   :  { %4809 = vrcp.f32 %v2666_v38 }
 0x723   :  { %v4510_v11 = vpack.c.bf16 %v2787_v5, %v2786_v42 }
 0x724   :  { %v2711_v45 = vpop.xlane.xlu0 %2710 }
 0x725   :  { %4811 = vrcp.f32 %v2711_v45  ;;  %v2708_v15 = vpop.xlane.xlu1 %2707  ;;  %4512 = vmatpush3.bf16.xpose.msk.msra.mxu0 %vm5464_vm4, %v4510_v11 }
 0x726   :  { %4813 = vrcp.f32 %v2708_v15  ;;  %4513 = vmatprep.subr.bf16.mxu0 %v6219_v7 }
 0x727   :  { %v4804_v12 = vpop.eup %4803 }
 0x728   :  { %v4806_v26 = vpop.eup %4805  ;;  %v2789_v39 = vmul.f32 %v4804_v12, %v5847_v0  ;;  %v2675_v41 = vpop.xlane.xlu0 %2674 }
 0x729   :  { %v2788_v53 = vmul.f32 %v4806_v26, %v5854_v21  ;;  %4815 = vrcp.f32 %v2675_v41  ;;  %v2672_v49 = vpop.xlane.xlu1 %2671 }
 0x72a   :  { %4817 = vrcp.f32 %v2672_v49 }
 0x72b   :  { %v4808_v8 = vpop.eup %4807  ;;  %v4514_v20 = vpack.c.bf16 %v2789_v39, %v2788_v53 }
 0x72c   :  { %v4810_v19 = vpop.eup %4809  ;;  %v2777_v46 = vmul.f32 %v4808_v8, %v5859_v63  ;;  %v2681_v6 = vpop.xlane.xlu0 %2680 }
 0x72d   :  { %v2776_v34 = vmul.f32 %v4810_v19, %v5863_v32  ;;  %4819 = vrcp.f32 %v2681_v6  ;;  %v2678_v47 = vpop.xlane.xlu1 %2677  ;;  %4516 = vmatpush3.bf16.xpose.msk.msra.mxu0 %vm5464_vm4, %v4514_v20 }
 0x72e   :  { %4821 = vrcp.f32 %v2678_v47  ;;  %4517 = vmatprep.subr.bf16.mxu0 %v6219_v7 }
 0x72f   :  { %v4812_v0 = vpop.eup %4811  ;;  %v4490_v21 = vpack.c.bf16 %v2777_v46, %v2776_v34 }
 0x730   :  { %v4814_v18 = vpop.eup %4813  ;;  %v2791_v25 = vmul.f32 %v4812_v0, %v5872_v37  ;;  %v2687_v54 = vpop.xlane.xlu0 %2686 }
 0x731   :  { %v2790_v2 = vmul.f32 %v4814_v18, %v5876_v50  ;;  %4492 = vmatpush3.bf16.xpose.msk.msra.mxu1 %vm5464_vm4, %v4490_v21  ;;  %v2684_v32 = vpop.xlane.xlu1 %2683  ;;  %4823 = vrcp.f32 %v2687_v54  ;;  %v3345_v18 = vld [vmem:[%s6206_s8] sm:$0xff]  ;;  %v3343_v54 = vld [vmem:[%s6205_s7 + $0x10] sm:$0xff] }
 0x732   :  { %4493 = vmatprep.subr.bf16.mxu1 %v6219_v7  ;;  %4825 = vrcp.f32 %v2684_v32  ;;  %v3435_v32 = vld [vmem:[%s6208_s10] sm:$0xff] }
 0x733   :  { %v4816_v63 = vpop.eup %4815  ;;  %v4518_v36 = vpack.c.bf16 %v2791_v25, %v2790_v2 }
 0x734   :  { %v4818_v1 = vpop.eup %4817  ;;  %v2779_v4 = vmul.f32 %v4816_v63, %v5881_v40  ;;  %v2717_v50 = vpop.xlane.xlu0 %2716  ;;  %v3347_v63 = vld [vmem:[%s6206_s8 + $0x10] sm:$0xff] }
 0x735   :  { %v2778_v22 = vmul.f32 %v4818_v1, %v5885_v23  ;;  %4520 = vmatpush3.bf16.xpose.msk.msra.mxu0 %vm5464_vm4, %v4518_v36  ;;  %v2714_v61 = vpop.xlane.xlu1 %2713  ;;  %4827 = vrcp.f32 %v2717_v50  ;;  %v3437_v36 = vld [vmem:[%s6208_s10 + $0x10] sm:$0xff]  ;;  %v3580_v1 = vld [vmem:[%s6210_s12] sm:$0xff] }
 0x736   :  { %4829 = vrcp.f32 %v2714_v61  ;;  %v3346_v61 = vld [vmem:[%s6206_s8 + $0x8] sm:$0xff] }
 0x737   :  { %v4820_v37 = vpop.eup %4819  ;;  %v4494_v62 = vpack.c.bf16 %v2779_v4, %v2778_v22  ;;  %v3582_v4 = vld [vmem:[%s6210_s12 + $0x10] sm:$0xff]  ;;  %v3212_v22 = vld [vmem:[%s6203_s5] sm:$0xff] }
 0x738   :  { %v4822_v48 = vpop.eup %4821  ;;  %v2781_v29 = vmul.f32 %v4820_v37, %v5891_v43  ;;  %v2723_v23 = vpop.xlane.xlu0 %2722 }
 0x739   :  { %4496 = vmatpush3.bf16.xpose.msk.msra.mxu1 %vm5464_vm4, %v4494_v62  ;;  %v2780_v40 = vmul.f32 %v4822_v48, %v5895_v24  ;;  %v2720_v5 = vpop.xlane.xlu1 %2719  ;;  %4831 = vrcp.f32 %v2723_v23  ;;  %v3217_v48 = vld [vmem:[%s6204_s6 + $0x8] sm:$0xff]  ;;  %v3344_v23 = vld [vmem:[%s6205_s7 + $0x18] sm:$0xff] }
 0x73a   :  { %4497 = vmatprep.subr.bf16.mxu1 %v6219_v7  ;;  %4833 = vrcp.f32 %v2720_v5 }
 0x73b   :  { %v4824_v14 = vpop.eup %4823  ;;  %v4498_v9 = vpack.c.bf16 %v2781_v29, %v2780_v40  ;;  %v3219_v29 = vld [vmem:[%s6204_s6 + $0x18] sm:$0xff]  ;;  %v3342_v40 = vld [vmem:[%s6205_s7 + $0x8] sm:$0xff] }
 0x73c   :  { %v4826_v52 = vpop.eup %4825  ;;  %v2783_v27 = vmul.f32 %v4824_v14, %v5900_v59  ;;  %v2729_v43 = vpop.xlane.xlu0 %2728  ;;  %v3348_v14 = vld [vmem:[%s6206_s8 + $0x18] sm:$0xff] }
 0x73d   :  { %v2782_v35 = vmul.f32 %v4826_v52, %v5904_v10  ;;  %4835 = vrcp.f32 %v2729_v43 }
 0x73f   :  { %v4828_v24 = vpop.eup %4827  ;;  %v4502_v33 = vpack.c.bf16 %v2783_v27, %v2782_v35  ;;  %v3436_v35 = vld [vmem:[%s6208_s10 + $0x8] sm:$0xff] }
 0x740   :  { %v4830_v42 = vpop.eup %4829  ;;  %v2735_v38 = vpop.xlane.xlu0 %2734  ;;  %v2793_v11 = vmul.f32 %v4828_v24, %v5908_v57 }
 0x741   :  { %4500 = vmatpush3.bf16.xpose.msk.msra.mxu1 %vm5464_vm4, %v4498_v9  ;;  %v2792_v45 = vmul.f32 %v4830_v42, %v5912_v60  ;;  %v3581_v42 = vld [vmem:[%s6210_s12 + $0x8] sm:$0xff] }
 0x742   :  { %4501 = vmatprep.subr.bf16.mxu1 %v6219_v7 }
 0x743   :  { %v4832_v59 = vpop.eup %4831  ;;  %v4522_v10 = vpack.c.bf16 %v2793_v11, %v2792_v45 }
 0x744   :  { %v2899_v15 = vpop.permute.xlu0 %2898  ;;  %v4834_v12 = vpop.eup %4833  ;;  %v2795_v26 = vmul.f32 %v4832_v59, %v5916_v51 }
 0x745   :  { %v2794_v57 = vmul.f32 %v4834_v12, %v5920_v44  ;;  %v3214_v12 = vld [vmem:[%s6203_s5 + $0x10] sm:$0xff] }
 0x747   :  { %v4526_v39 = vpack.c.bf16 %v2795_v26, %v2794_v57  ;;  %v4836_v53 = vpop.eup %4835 }
 0x748   :  { %v2797_v49 = vmul.f32 %v4836_v53, %v5924_v3 }
 0x749   :  { %4504 = vmatpush3.bf16.xpose.msk.msra.mxu1 %vm5464_vm4, %v4502_v33  ;;  %v3438_v33 = vld [vmem:[%s6208_s10 + $0x18] sm:$0xff] }
 0x74a   :  { %4521 = vmatprep.subr.bf16.mxu1 %v6219_v7 }
 0x750   :  { %4319 = vmatmul.mubr.msk.f32.vlgmr.msra.gmra.mrb[44].mxu1 %vm1031_vm2, %v2899_v15 }
 0x751   :  { %4524 = vmatpush3.bf16.xpose.msk.msra.mxu1 %vm5464_vm4, %v4522_v10  ;;  %4356 = vmatprep.mubr.msk.f32.mxu1 %vm4884_vm3, %v6220_v56  ;;  %v3213_v10 = vld [vmem:[%s6203_s5 + $0x8] sm:$0xff] }
 0x752   :  { %4525 = vmatprep.subr.bf16.mxu1 %v6219_v7 }
 0x759   :  { %4528 = vmatpush3.bf16.xpose.msk.msra.mxu1 %vm5464_vm4, %v4526_v39 }
 0x75a   :  { %4529 = vmatprep.subr.bf16.mxu1 %v6219_v7 }
 0x75e   :  { %v2726_v60 = vpop.xlane.xlu1 %2725 }
 0x75f   :  { %4837 = vrcp.f32 %v2726_v60 }
 0x760   :  { %4839 = vrcp.f32 %v2735_v38 }
 0x762   :  { %v2997_v41 = vpop.permute.xlu1 %2996 }
 0x763   :  { %4338 = vmatmul.mubr.msk.f32.vlgmr.msra.gmra.mrb[42].mxu0 %vm1031_vm2, %v2997_v41 }
 0x764   :  { %4367 = vmatprep.mubr.msk.f32.mxu0 %vm224_vm0, %v3212_v22 }
 0x769   :  { %v4838_v56 = vpop.eup %4837 }
 0x76a   :  { %v2796_v51 = vmul.f32 %v4838_v56, %v5937_v31  ;;  %v4840_v20 = vpop.eup %4839 }
 0x76b   :  { %v2799_v46 = vmul.f32 %v4840_v20, %v5930_v55  ;;  %v3216_v55 = vld [vmem:[%s6204_s6] sm:$0xff] }
 0x76c   :  { %v4530_v8 = vpack.c.bf16 %v2797_v49, %v2796_v51  ;;  %v4853_v49 = vld [vmem:[%s6198_s0 + $0x8] sm:$0xff] }
 0x76e   :  { %4532 = vmatpush3.bf16.xpose.msk.msra.mxu1 %vm5464_vm4, %v4530_v8  ;;  %v4854_v8 = vld [vmem:[%s6198_s0] sm:$0xff] }
 0x76f   :  { %4533 = vmatprep.subr.bf16.mxu1 %v6219_v7 }
 0x793   :  { %v2732_v44 = vpop.xlane.xlu1 %2731 }
 0x794   :  { %4841 = vrcp.f32 %v2732_v44 }
 0x797   :  { %v3095_v3 = vpop.permute.xlu1 %3094 }
 0x79e   :  { %v4842_v19 = vpop.eup %4841 }
 0x79f   :  { %v2798_v6 = vmul.f32 %v4842_v19, %v5967_v58  ;;  %v3341_v58 = vld [vmem:[%s6205_s7] sm:$0xff] }
 0x7a1   :  { %v4534_v34 = vpack.c.bf16 %v2799_v46, %v2798_v6 }
 0x7a3   :  { %4536 = vmatpush3.bf16.xpose.msk.msra.mxu1 %vm5464_vm4, %v4534_v34 }
 0x7aa   :  { %4357 = vmatmul.mubr.msk.f32.vlgmr.msra.gmra.mrb[46].mxu1 %vm1031_vm2, %v3095_v3 }
 0x7ca   :  { %v2894_v31 = vpop.f32.mrb[40].mxu0 }
 0x7cb   :  { %v4301_v47 = vpop.f32.mrb[41].mxu0 }
 0x823   :  { %v2992_v0 = vpop.f32.mrb[44].mxu1 }
 0x824   :  { %v4575_v7 = vpack.i.bf16 %v2992_v0, %v2894_v31  ;;  %v4320_v21 = vpop.f32.mrb[45].mxu1  ;;  %v4855_v31 = vld [vmem:[%s6198_s0 + $0x10] sm:$0xff]  ;;  %v4856_v0 = vld [vmem:[%s6198_s0 + $0x18] sm:$0xff] }
 0x826   :  { %4576 = vrot.lane.b32.xlu0 %v4575_v7, %s4882_s16 }
 0x82a   :  { %3222 = vperm.xlu0 %4573, %v3216_v55  }
 0x82e   :  { %3232 = vperm.xlu0 %4573, %v3218_v13  }
 0x832   :  { %3385 = vperm.xlu0 %4573, %v3341_v58  }
 0x836   :  { %v3090_v25 = vpop.f32.mrb[42].mxu0  ;;  %3409 = vperm.xlu0 %4573, %v3345_v18  }
 0x837   :  { %v4339_v2 = vpop.f32.mrb[43].mxu0 }
 0x83a   :  { %3395 = vperm.xlu0 %4573, %v3343_v54  }
 0x83e   :  { %3419 = vperm.xlu0 %4573, %v3347_v63  }
 0x842   :  { %3441 = vperm.xlu0 %4573, %v3435_v32  }
 0x846   :  { %3451 = vperm.xlu0 %4573, %v3437_v36  }
 0x84a   :  { %3586 = vperm.xlu0 %4573, %v3580_v1  }
 0x84e   :  { %3596 = vperm.xlu0 %4573, %v3582_v4  }
 0x87d   :  { %v3188_v37 = vpop.f32.mrb[46].mxu1 }
 0x87e   :  { %v4580_v50 = vpack.i.bf16 %v3188_v37, %v3090_v25  ;;  %v4358_v62 = vpop.f32.mrb[47].mxu1 }
 0x880   :  { %4581 = vrot.lane.b32.xlu1 %v4580_v50, %s4882_s16 }
 0x884   :  { %3227 = vperm.xlu1 %4574, %v3217_v48  }
 0x888   :  { %3237 = vperm.xlu1 %4574, %v3219_v29  }
 0x88c   :  { %3390 = vperm.xlu1 %4574, %v3342_v40  }
 0x890   :  { %3414 = vperm.xlu1 %4574, %v3346_v61  }
 0x894   :  { %3400 = vperm.xlu1 %4574, %v3344_v23  }
 0x898   :  { %v4577_v9 = vpop.permute.xlu0 %4576  ;;  %3424 = vperm.xlu1 %4574, %v3348_v14  }
 0x899   :  { %v4579_v52 = vunpack.i.h.bf16 %v4577_v9  ;;  %v4578_v27 = vunpack.i.l.bf16 %v4577_v9 }
 0x89b   :  { %v3208_v5 = vsel %vm1031_vm2, %v5599_v30, %v4578_v27  ;;  %v3209_v43 = vsel %vm1031_vm2, %v5614_v17, %v4579_v52  ;;  %v3583_v30 = vld [vmem:[%s6210_s12 + $0x18] sm:$0xff] }
 0x89c   :  { %3446 = vperm.xlu1 %4574, %v3436_v35   ;;  %v4537_v24 = vpack.c.bf16 %v3209_v43, %v3208_v5 }
 0x89e   :  { %4538 = vmatprep.subr.bf16.mxu0 %v4537_v24 }
 0x89f   :  { %4540 = vmatpush3.bf16.msra.mxu0 %v4537_v24 }
 0x8a0   :  { %3456 = vperm.xlu1 %4574, %v3438_v33  }
 0x8a4   :  { %3591 = vperm.xlu1 %4574, %v3581_v42  }
 0x8a8   :  { %3601 = vperm.xlu1 %4574, %v3583_v30  }
 0x8a9   :  { %v3223_v26 = vpop.permute.xlu0 %3222 }
 0x8ad   :  { %v3233_v56 = vpop.permute.xlu0 %3232 }
 0x8b1   :  { %v3386_v35 = vpop.permute.xlu0 %3385 }
 0x8b5   :  { %v3410_v33 = vpop.permute.xlu0 %3409 }
 0x8b9   :  { %v3396_v30 = vpop.permute.xlu0 %3395 }
 0x8f2   :  { %v4582_v17 = vpop.permute.xlu1 %4581 }
 0x8f3   :  { %v4584_v38 = vunpack.i.h.bf16 %v4582_v17  ;;  %v4583_v11 = vunpack.i.l.bf16 %v4582_v17 }
 0x8f5   :  { %v3210_v45 = vsel %vm1031_vm2, %v5612_v16, %v4583_v11  ;;  %v3211_v59 = vsel %vm1031_vm2, %v5628_v28, %v4584_v38  ;;  %v3215_v16 = vld [vmem:[%s6203_s5 + $0x18] sm:$0xff]  ;;  %v3431_v28 = vld [vmem:[%s6207_s9] sm:$0xff] }
 0x8f6   :  { %v4541_v15 = vpack.c.bf16 %v3211_v59, %v3210_v45  ;;  %4381 = vmatprep.mubr.msk.f32.mxu1 %vm224_vm0, %v3431_v28 }
 0x8f8   :  { %4542 = vmatprep.subr.bf16.mxu0 %v4541_v15 }
 0x8f9   :  { %4544 = vmatpush3.bf16.msra.mxu0 %v4541_v15 }
 0x8fc   :  { %4368 = vmatmul.mubr.msk.f32.vlgmr.msra.gmra.mrb[44].mxu0 %vm224_vm0, %v3213_v10 }
 0x8fd   :  { %4370 = vmatprep.mubr.msk.f32.mxu0 %vm224_vm0, %v3214_v12 }
 0x900   :  { %4371 = vmatmul.mubr.msk.f32.gmra.mrb[46].mxu0 %vm224_vm0, %v3215_v16 }
 0x903   :  { %v3228_v57 = vpop.permute.xlu1 %3227 }
 0x907   :  { %v3238_v19 = vpop.permute.xlu1 %3237 }
 0x90b   :  { %v3391_v5 = vpop.permute.xlu1 %3390 }
 0x90f   :  { %v3415_v42 = vpop.permute.xlu1 %3414 }
 0x913   :  { %v3401_v17 = vpop.permute.xlu1 %3400 }
 0x9cf   :  { %v4369_v39 = vpop.f32.mrb[44].mxu0 }
 0x9d0   :  { %v3324_v60 = vadd.f32 %v4369_v39, %v3228_v57  ;;  %v3318_v41 = vpop.f32.mrb[45].mxu0  ;;  %v3425_v57 = vpop.permute.xlu1 %3424 }
 0x9d1   :  { %v3319_v53 = vadd.f32 %v3318_v41, %v3223_v26  ;;  %v3420_v26 = vpop.permute.xlu0 %3419 }
 0x9d2   :  { %v6129_v51 = vadd.f32 %v4853_v49, %v3324_v60 }
 0x9d3   :  { %v6134_v44 = vadd.f32 %v4854_v8, %v3319_v53  ;;  %v4372_v20 = vpop.f32.mrb[46].mxu0  ;;  %v3432_v8 = vld [vmem:[%s6207_s9 + $0x8] sm:$0xff] }
 0x9d4   :  { %v3328_v46 = vpop.f32.mrb[47].mxu0  ;;  %v3334_v6 = vadd.f32 %v4372_v20, %v3238_v19  ;;  %v3433_v20 = vld [vmem:[%s6207_s9 + $0x10] sm:$0xff]  ;;  %v3434_v19 = vld [vmem:[%s6207_s9 + $0x18] sm:$0xff] }
 0x9d5   :  { %v3329_v34 = vadd.f32 %v3328_v46, %v3233_v56  ;;  %v3349_v3 = vadd.f32 %v6129_v51, %v6134_v44  ;;  %v3576_v46 = vld [vmem:[%s6209_s11] sm:$0xff] }
 0x9d6   :  { %v6146_v7 = vadd.f32 %v4856_v0, %v3334_v6  ;;  %v3578_v6 = vld [vmem:[%s6209_s11 + $0x10] sm:$0xff]  ;;  %4395 = vmatprep.mubr.msk.f32.mxu0 %vm224_vm0, %v3576_v46 }
 0x9d7   :  { %v6141_v47 = vadd.f32 %v4855_v31, %v3329_v34  ;;  %v3447_v34 = vpop.permute.xlu1 %3446 }
 0x9d9   :  { %v3350_v21 = vadd.f32 %v3349_v3, %v6141_v47  ;;  %v3442_v3 = vpop.permute.xlu0 %3441 }
 0x9db   :  { %v3351_v55 = vadd.f32 %v3350_v21, %v6146_v7 }
 0x9dd   :  { %v3352_v13 = vrot.slane %v3351_v55, 4 }
 0x9df   :  { %v3353_v58 = vadd.f32 %v3352_v13, %v3351_v55 }
 0x9e1   :  { %v3354_v18 = vrot.slane %v3353_v58, 2 }
 0x9e3   :  { %v3355_v25 = vadd.f32 %v3354_v18, %v3353_v58  ;;  %v3457_v58 = vpop.permute.xlu1 %3456 }
 0x9e5   :  { %v3356_v2 = vrot.slane %v3355_v25, 1 }
 0x9e7   :  { %v3357_v54 = vadd.f32 %v3356_v2, %v3355_v25  ;;  %v3452_v2 = vpop.permute.xlu0 %3451 }
 0x9e9   :  { %v3358_v63 = vmul.f32 0.03125, %v3357_v54 }
 0x9eb   :  { %v3359_v32 = vsub.f32 %v6134_v44, %v3358_v63  ;;  %v3360_v36 = vsub.f32 %v6129_v51, %v3358_v63  ;;  %v3361_v1 = vsub.f32 %v6141_v47, %v3358_v63  ;;  %v3362_v4 = vsub.f32 %v6146_v7, %v3358_v63 }
 0x9ed   :  { %v3363_v22 = vmul.f32 %v3359_v32, %v3359_v32  ;;  %v3364_v37 = vmul.f32 %v3360_v36, %v3360_v36  ;;  %v3365_v50 = vmul.f32 %v3361_v1, %v3361_v1  ;;  %v3366_v48 = vmul.f32 %v3362_v4, %v3362_v4 }
 0x9ef   :  { %v3367_v62 = vadd.f32 %v3364_v37, %v3363_v22 }
 0x9f1   :  { %v3368_v29 = vadd.f32 %v3367_v62, %v3365_v50 }
 0x9f3   :  { %v3369_v40 = vadd.f32 %v3368_v29, %v3366_v48 }
 0x9f5   :  { %v3370_v61 = vrot.slane %v3369_v40, 4 }
 0x9f7   :  { %v3371_v23 = vadd.f32 %v3370_v61, %v3369_v40 }
 0x9f9   :  { %v3372_v14 = vrot.slane %v3371_v23, 2 }
 0x9fb   :  { %v3373_v9 = vadd.f32 %v3372_v14, %v3371_v23 }
 0x9fd   :  { %v3374_v52 = vrot.slane %v3373_v9, 1 }
 0x9ff   :  { %v3375_v27 = vadd.f32 %v3374_v52, %v3373_v9 }
 0xa01   :  { %v3376_v43 = vmul.f32 0.03125, %v3375_v27 }
 0xa03   :  { %v3377_v24 = vadd.f32 1e-05, %v3376_v43 }
 0xa05   :  { %4843 = vrsqrt.f32 %v3377_v24 }
 0xa0f   :  { %v4844_v38 = vpop.eup %4843 }
 0xa10   :  { %v3381_v11 = vmul.f32 %v4844_v38, %v3361_v1  ;;  %v3379_v45 = vmul.f32 %v4844_v38, %v3359_v32  ;;  %v3380_v59 = vmul.f32 %v4844_v38, %v3360_v36  ;;  %v3382_v15 = vmul.f32 %v4844_v38, %v3362_v4 }
 0xa12   :  { %v3403_v10 = vmul.f32 %v3386_v35, %v3379_v45  ;;  %v3404_v12 = vmul.f32 %v3391_v5, %v3380_v59  ;;  %v3405_v16 = vmul.f32 %v3396_v30, %v3381_v11  ;;  %v3406_v28 = vmul.f32 %v3401_v17, %v3382_v15  ;;  %v3587_v30 = vpop.permute.xlu0 %3586  ;;  %v3592_v17 = vpop.permute.xlu1 %3591 }
 0xa14   :  { %v3427_v39 = vadd.f32 %v3410_v33, %v3403_v10  ;;  %v3428_v60 = vadd.f32 %v3415_v42, %v3404_v12  ;;  %v3429_v41 = vadd.f32 %v3420_v26, %v3405_v16  ;;  %v3430_v53 = vadd.f32 %v3425_v57, %v3406_v28  ;;  %v3577_v33 = vld [vmem:[%s6209_s11 + $0x8] sm:$0xff]  ;;  %v3579_v42 = vld [vmem:[%s6209_s11 + $0x18] sm:$0xff]  ;;  %s4857_s11 = scalar_lea.vmem %s3715_s22, 512 }
 0xa15   :  { %p4858_p0 = scmp.ne.s32.totalorder %s3715_s22, %s4857_s11  ;;  %p4863_p2 = scmp.lt.s32.totalorder %s4857_s11, %s4857_s11 }
 0xa16   :  { %v4545_v56 = vpack.c.bf16 %v3428_v60, %v3427_v39  ;;  %v4549_v49 = vpack.c.bf16 %v3430_v53, %v3429_v41  ;;  %v3597_v38 = vpop.permute.xlu0 %3596  ;;  %v3602_v11 = vpop.permute.xlu1 %3601 }
 0xa17   :  { %p4864_p3 = por %p4863_p2, %p4862_p1 }
 0xa18   :  { %4546 = vmatprep.subr.bf16.mxu1 %v4545_v56 }
 0xa19   :  { %4548 = vmatpush3.bf16.msra.mxu1 %v4545_v56  ;;  %p4865_p4 = pnand %p4864_p3, %p4858_p0 }
 0xa1a   :  { %4550 = vmatprep.subr.bf16.mxu1 %v4549_v49 }
 0xa1d   :  { %4552 = vmatpush3.bf16.msra.mxu1 %v4549_v49 }
 0xa20   :  { %4382 = vmatmul.mubr.msk.f32.vlgmr.msra.gmra.mrb[48].mxu1 %vm224_vm0, %v3432_v8 }
 0xa21   :  { %4384 = vmatprep.mubr.msk.f32.mxu1 %vm224_vm0, %v3433_v20 }
 0xa24   :  { %4385 = vmatmul.mubr.msk.f32.gmra.mrb[50].mxu1 %vm224_vm0, %v3434_v19 }
 0xa25   :  { %4398 = vmatprep.mubr.msk.f32.mxu1 %vm224_vm0, %v3578_v6 }
 0xaf3   :  { %v4383_v31 = vpop.f32.mrb[48].mxu1 }
 0xaf4   :  { %v3543_v0 = vadd.f32 %v4383_v31, %v3447_v34  ;;  %v3537_v21 = vpop.f32.mrb[49].mxu1 }
 0xaf5   :  { %v3538_v55 = vadd.f32 %v3537_v21, %v3442_v3 }
 0xaf6   :  { %v3561_v13 = vmul.f32 0.70710677, %v3543_v0  ;;  %v3557_v37 = vmul.f32 0.5, %v3543_v0 }
 0xaf7   :  { %v3560_v18 = vmul.f32 0.70710677, %v3538_v55  ;;  %v4386_v25 = vpop.f32.mrb[50].mxu1  ;;  %v3556_v62 = vmul.f32 0.5, %v3538_v55 }
 0xaf8   :  { %4845 = verf.f32 %v3561_v13  ;;  %v3553_v54 = vadd.f32 %v4386_v25, %v3457_v58  ;;  %v3547_v63 = vpop.f32.mrb[51].mxu1 }
 0xaf9   :  { %4847 = verf.f32 %v3560_v18  ;;  %v3548_v32 = vadd.f32 %v3547_v63, %v3452_v2 }
 0xafa   :  { %v3563_v36 = vmul.f32 0.70710677, %v3553_v54  ;;  %v3559_v14 = vmul.f32 0.5, %v3553_v54 }
 0xafb   :  { %v3562_v1 = vmul.f32 0.70710677, %v3548_v32  ;;  %v3558_v27 = vmul.f32 0.5, %v3548_v32 }
 0xafc   :  { %4849 = verf.f32 %v3563_v36 }
 0xafd   :  { %4851 = verf.f32 %v3562_v1 }
 0xb02   :  { %v4846_v4 = vpop.eup %4845 }
 0xb03   :  { %v4848_v22 = vpop.eup %4847  ;;  %v3569_v50 = vadd.f32 1.0, %v4846_v4 }
 0xb04   :  { %v3568_v48 = vadd.f32 1.0, %v4848_v22 }
 0xb05   :  { %v3573_v29 = vmul.f32 %v3569_v50, %v3557_v37 }
 0xb06   :  { %v4850_v40 = vpop.eup %4849  ;;  %v3572_v61 = vmul.f32 %v3568_v48, %v3556_v62 }
 0xb07   :  { %v4852_v23 = vpop.eup %4851  ;;  %v3571_v9 = vadd.f32 1.0, %v4850_v40 }
 0xb08   :  { %v4553_v52 = vpack.c.bf16 %v3573_v29, %v3572_v61  ;;  %v3570_v35 = vadd.f32 1.0, %v4852_v23 }
 0xb09   :  { %v3575_v5 = vmul.f32 %v3571_v9, %v3559_v14 }
 0xb0a   :  { %v3574_v43 = vmul.f32 %v3570_v35, %v3558_v27  ;;  %4554 = vmatprep.subr.bf16.mxu0 %v4553_v52  ;;  %4561 = vmatprep.subr.bf16.mxu1 %v4553_v52 }
 0xb0b   :  { %4556 = vmatpush3.bf16.msra.mxu0 %v4553_v52  ;;  %4563 = vmatpush3.bf16.msra.mxu1 %v4553_v52 }
 0xb0c   :  { %v4557_v24 = vpack.c.bf16 %v3575_v5, %v3574_v43 }
 0xb0e   :  { %4558 = vmatprep.subr.bf16.mxu0 %v4557_v24  ;;  %4562 = vmatprep.subr.bf16.mxu1 %v4557_v24 }
 0xb0f   :  { %4560 = vmatpush3.bf16.msra.mxu0 %v4557_v24  ;;  %4564 = vmatpush3.bf16.msra.mxu1 %v4557_v24 }
 0xb12   :  { %4396 = vmatmul.mubr.msk.f32.vlgmr.msra.gmra.mrb[48].mxu0 %vm224_vm0, %v3577_v33  ;;  %4399 = vmatmul.mubr.msk.f32.vlgmr.msra.gmra.mrb[52].mxu1 %vm224_vm0, %v3579_v42 }
 0xbe5   :  { %v4397_v45 = vpop.f32.mrb[48].mxu0  ;;  %v4400_v59 = vpop.f32.mrb[52].mxu1 }
 0xbe6   :  { %v3688_v15 = vadd.f32 %v4397_v45, %v3592_v17  ;;  %v3698_v10 = vadd.f32 %v4400_v59, %v3602_v11  ;;  %v3682_v12 = vpop.f32.mrb[49].mxu0  ;;  %v3692_v16 = vpop.f32.mrb[53].mxu1 }
 0xbe7   :  { %v3683_v28 = vadd.f32 %v3682_v12, %v3587_v30  ;;  %v3693_v26 = vadd.f32 %v3692_v16, %v3597_v38 }
 0xbe8   :  { %v3702_v57 = vadd.f32 %v3688_v15, %v6129_v51  ;;  %v3704_v39 = vadd.f32 %v3698_v10, %v6146_v7 }
 0xbe9   :  { %v3701_v60 = vadd.f32 %v3683_v28, %v6134_v44  ;;  %v3703_v41 = vadd.f32 %v3693_v26, %v6141_v47 }
 0xbea   :  { %3706 = vst [vmem:[#allocation2 + $0x8] sm:$0xff] %v3702_v57  ;;  %3708 = vst [vmem:[#allocation2 + $0x18] sm:$0xff] %v3704_v39 }
 0xbeb   :  { %3705 = vst [vmem:[#allocation2] sm:$0xff] %v3701_v60  ;;  %3707 = vst [vmem:[#allocation2 + $0x10] sm:$0xff] %v3703_v41 }
 0xbec   :  { %4868 = shalt.err (!%p4865_p4)
}
 0xbed   :  { %s4869_s23 = scalar_lea.hbm %s6211_s13, 512 }
 0xbee   :  { %p4870_p5 = scmp.ne.s32.totalorder %s6211_s13, %s4869_s23  ;;  %p4873_p6 = scmp.lt.u32.totalorder %s4869_s23, %s6211_s13 }
 0xbf0   :  { %p4875_p7 = pnand %p4873_p6, %p4870_p5 }
 0xbf2   :  { %4878 = shalt.err (!%p4875_p7)
}
 0xbf3   :  { %s4887_s5 = smov 128   ;;  %s4888_s1 = smov 8  }
 0xbf4   :  { %3720 = dma.vmem_to_hbm [thread:$0]  %s3715_s22, 512, %s6211_s13, [#allocation3], %s4887_s5, %s4887_s5, %s4888_s1  }
 0xbf5   :  { %4879 = dma.done.wait [#allocation3], 512  }
 0xbf6   :  { %4880 = vsyncadd [#allocation3], 4294966784 }
 0xbf7   :  { %3724 = vsyncpa [#allocation3], 1 }

</bundles_post_ra>
